<compile_context>
chip_gen: v6e
topology: v6e:2x2x1
jax: 0.10.0
libtpu: 0.0.40
codegen_flags: <defaults>
</compile_context>

<pallas_src>
import functools

import jax
import jax.numpy as jnp
from jax.experimental import pallas as pl
from jax.experimental.pallas import tpu as pltpu


# ---------------------------------------------------------------------------
# hp
# ---------------------------------------------------------------------------
class hp:
    n_mels_channel = 32
    hidden_dim = 32
    num_layer = 2
    speaker_dim = 16


# ---------------------------------------------------------------------------
# Pallas kernel
# ---------------------------------------------------------------------------
def _make_speaker_encoder_kernel(num_layers, hidden_dim, seq_len, batch_pad, batch_real):
    """Kernel refs (all full blocks resident in VMEM):
         x_ref        (T*Bp, M)      time-major, batch padded to Bp, flattened
         w_ih0        (M, 4H)
         w_hh0        (H, 4H)
         b0           (1, 4H)        b_ih + b_hh (layer 0)
         [w_stack_l, b_l] * (L-1)    (2H, 4H), (1, 4H)   (stacked [W_ih; W_hh])
         w_proj       (H, S_pad)     zero-padded columns beyond speaker_dim
         b_proj       (1, S_pad)
         out_ref      (Bp, S_pad)
         g0_scratch   (T*Bp, 4H)     precomputed layer-0 input gates
    """
    H = hidden_dim
    L = num_layers
    T = seq_len
    Bp = batch_pad

    def kernel(*refs):
        x_ref = refs[0]
        w_ih0_ref = refs[1]
        w_hh0_ref = refs[2]
        b0_ref = refs[3]
        upper_refs = refs[4:4 + 2 * (L - 1)]
        w_proj_ref = refs[4 + 2 * (L - 1)]
        b_proj_ref = refs[5 + 2 * (L - 1)]
        out_ref = refs[6 + 2 * (L - 1)]
        g0_ref = refs[7 + 2 * (L - 1)]   # VMEM scratch

        # ---- layer-0 input gates for all T steps: one well-shaped MXU call ----
        g0_ref[...] = (
            jnp.dot(x_ref[...], w_ih0_ref[...], preferred_element_type=jnp.float32)
            + b0_ref[...]
        )

        # ---- hoist weight loads / bias broadcasts out of the recurrence ----
        w_hh0 = w_hh0_ref[...]                                    # (H, 4H)
        w_upper = [upper_refs[2 * l][...] for l in range(L - 1)]  # (2H, 4H)
        b_upper = [
            jnp.broadcast_to(upper_refs[2 * l + 1][...], (Bp, 4 * H))
            for l in range(L - 1)
        ]

        def lstm_cell(gates, c_prev):
            # 2 full-width EUP pushes instead of 4 narrow slices.
            sig = jax.nn.sigmoid(gates)      # (Bp, 4H)
            th = jnp.tanh(gates)             # (Bp, 4H)
            i_g = sig[:, 0:H]
            f_g = sig[:, H:2 * H]
            o_g = sig[:, 3 * H:4 * H]
            g_g = th[:, 2 * H:3 * H]
            c = f_g * c_prev + i_g * g_g
            h = o_g * jnp.tanh(c)
            return h, c

        h_init = tuple(jnp.zeros((Bp, H), jnp.float32) for _ in range(L))
        c_init = tuple(jnp.zeros((Bp, H), jnp.float32) for _ in range(L))

        def step(t, carry):
            hs, cs = carry
            # layer 0: input gates precomputed; only the recurrent dot is on the chain
            start = pl.multiple_of(t * Bp, Bp)
            gates0 = g0_ref[pl.ds(start, Bp), :] + jnp.dot(
                hs[0], w_hh0, preferred_element_type=jnp.float32
            )
            h, c = lstm_cell(gates0, cs[0])
            new_h = [h]
            new_c = [c]
            # upper layers: single fused matmul per layer per step
            for l in range(1, L):
                xi = jnp.concatenate([new_h[l - 1], hs[l]], axis=-1)  # (Bp, 2H)
                gates = (
                    jnp.dot(xi, w_upper[l - 1], preferred_element_type=jnp.float32)
                    + b_upper[l - 1]
                )
                h, c = lstm_cell(gates, cs[l])
                new_h.append(h)
                new_c.append(c)
            return tuple(new_h), tuple(new_c)

        # T is static -> fully unrolled so LLO can overlap MXU/EUP/VPU across steps.
        hs, _ = jax.lax.fori_loop(0, T, step, (h_init, c_init), unroll=True)

        # x = x[:, -1]  -> last hidden of the top LSTM layer
        last = hs[-1]                                             # (Bp, H)

        # projection (lane-dense: S padded to 128 with zero weight/bias columns)
        proj = (
            jnp.dot(last, w_proj_ref[...], preferred_element_type=jnp.float32)
            + b_proj_ref[...]
        )                                                         # (Bp, S_pad)

        # x = x / torch.norm(x): Frobenius norm over the REAL (B, S) entries only.
        # Padded columns are exactly zero (zero-padded weights/bias); mask padded rows.
        row_mask = jax.lax.broadcasted_iota(jnp.int32, proj.shape, 0) < batch_real
        ssq = jnp.sum(jnp.where(row_mask, proj * proj, 0.0))
        out_ref[...] = proj * jax.lax.rsqrt(ssq)

    return kernel


# ---------------------------------------------------------------------------
# Wrapper (parameter plumbing + pallas_call)
# ---------------------------------------------------------------------------
def init_params(key):
    """Deterministic init mirroring SpeakerEncoder.init_params (LSTM bias=0, xavier_normal)."""
    M, H, L, S = hp.n_mels_channel, hp.hidden_dim, hp.num_layer, hp.speaker_dim
    params = {}
    keys = jax.random.split(key, 2 * L + 2)
    k_idx = 0
    for l in range(L):
        in_l = M if l == 0 else H
        std_ih = (2.0 / (4 * H + in_l)) ** 0.5
        std_hh = (2.0 / (4 * H + H)) ** 0.5
        params[f"w_ih_{l}"] = std_ih * jax.random.normal(
            keys[k_idx], (4 * H, in_l), jnp.float32
        )
        k_idx += 1
        params[f"w_hh_{l}"] = std_hh * jax.random.normal(
            keys[k_idx], (4 * H, H), jnp.float32
        )
        k_idx += 1
        # fused LSTM bias (b_ih + b_hh); zero per init_params.
        params[f"b_{l}"] = jnp.zeros((4 * H,), jnp.float32)
    params["w_proj"] = 0.1 * jax.random.normal(keys[k_idx], (S, H), jnp.float32)
    k_idx += 1
    params["b_proj"] = 0.01 * jax.random.normal(keys[k_idx], (S,), jnp.float32)
    return params


@jax.jit
def speaker_encoder_forward(x, params):
    """x: (B, T, n_mels_channel) float32 (batch_first). Returns (B, speaker_dim)."""
    B, T, M = x.shape
    H, L, S = hp.hidden_dim, hp.num_layer, hp.speaker_dim

    B_pad = max(8, ((B + 7) // 8) * 8)     # full sublane group
    S_pad = ((S + 127) // 128) * 128       # lane-dense output

    # time-major, zero-pad batch rows, flatten (T, B_pad, M) -> (T*B_pad, M)
    x_tm = jnp.transpose(x, (1, 0, 2)).astype(jnp.float32)          # (T, B, M)
    x_tm = jnp.pad(x_tm, ((0, 0), (0, B_pad - B), (0, 0)))          # (T, B_pad, M)
    x_flat = x_tm.reshape(T * B_pad, M)

    inputs = [
        x_flat,
        jnp.transpose(params["w_ih_0"]),                 # (M, 4H)
        jnp.transpose(params["w_hh_0"]),                 # (H, 4H)
        params["b_0"].reshape(1, 4 * H),                 # (1, 4H)
    ]
    for l in range(1, L):
        w_stack = jnp.concatenate(
            [jnp.transpose(params[f"w_ih_{l}"]), jnp.transpose(params[f"w_hh_{l}"])],
            axis=0,
        )                                                # (2H, 4H)
        inputs.append(w_stack)
        inputs.append(params[f"b_{l}"].reshape(1, 4 * H))
    w_proj_pad = jnp.pad(jnp.transpose(params["w_proj"]), ((0, 0), (0, S_pad - S)))  # (H, S_pad)
    b_proj_pad = jnp.pad(params["b_proj"].reshape(1, S), ((0, 0), (0, S_pad - S)))   # (1, S_pad)
    inputs += [w_proj_pad, b_proj_pad]

    kernel = _make_speaker_encoder_kernel(L, H, T, B_pad, B)
    vmem_spec = pl.BlockSpec(memory_space=pltpu.MemorySpace.VMEM)

    # TODO(synk): for large B on v7x, add a batch-tile grid (dimension_semantics=
    # ("parallel",)) with a cross-tile norm reduction, and tile x over T with a
    # BlockSpec so the slab fits v7x's smaller VMEM.
    out_pad = pl.pallas_call(
        kernel,
        out_shape=jax.ShapeDtypeStruct((B_pad, S_pad), jnp.float32),
        in_specs=[vmem_spec] * len(inputs),
        out_specs=vmem_spec,
        scratch_shapes=[pltpu.VMEM((T * B_pad, 4 * H), jnp.float32)],
    )(*inputs)

    return out_pad[:B, :S]


# ---------------------------------------------------------------------------
# Pure-JAX reference (correctness check)
# ---------------------------------------------------------------------------
def speaker_encoder_reference(x, params):
    B, T, M = x.shape
    H, L, S = hp.hidden_dim, hp.num_layer, hp.speaker_dim
    seq = x
    for l in range(L):
        w_ih = params[f"w_ih_{l}"]
        w_hh = params[f"w_hh_{l}"]
        b = params[f"b_{l}"]
        h = jnp.zeros((B, H), jnp.float32)
        c = jnp.zeros((B, H), jnp.float32)
        outs = []
        for t in range(T):
            gates = seq[:, t] @ w_ih.T + h @ w_hh.T + b
            i_g = jax.nn.sigmoid(gates[:, 0:H])
            f_g = jax.nn.sigmoid(gates[:, H:2 * H])
            g_g = jnp.tanh(gates[:, 2 * H:3 * H])
            o_g = jax.nn.sigmoid(gates[:, 3 * H:4 * H])
            c = f_g * c + i_g * g_g
            h = o_g * jnp.tanh(c)
            outs.append(h)
        seq = jnp.stack(outs, axis=1)
    last = seq[:, -1]
    proj = last @ params["w_proj"].T + params["b_proj"]
    return proj / jnp.sqrt(jnp.sum(proj * proj))


# ---------------------------------------------------------------------------
if __name__ == "__main__":
    key = jax.random.PRNGKey(0)
    k_param, k_x = jax.random.split(key)

    B, T = 2, 8
    x = jax.random.normal(k_x, (B, T, hp.n_mels_channel), jnp.float32)
    params = init_params(k_param)

    out = speaker_encoder_forward(x, params)
    out = jax.block_until_ready(out)

    ref = speaker_encoder_reference(x, params)
    assert out.shape == (B, hp.speaker_dim)
    assert jnp.allclose(out, ref, rtol=1e-4, atol=1e-5), (out, ref)

    print("KERNEL_OK")
</pallas_src>

<mosaic_0001>
module attributes {stable_mosaic.version = 11 : i64} {
  func.func @kernel(%arg0: memref<64x32xf32, #tpu.memory_space<vmem>>, %arg1: memref<32x128xf32, #tpu.memory_space<vmem>>, %arg2: memref<32x128xf32, #tpu.memory_space<vmem>>, %arg3: memref<1x128xf32, #tpu.memory_space<vmem>>, %arg4: memref<64x128xf32, #tpu.memory_space<vmem>>, %arg5: memref<1x128xf32, #tpu.memory_space<vmem>>, %arg6: memref<32x128xf32, #tpu.memory_space<vmem>>, %arg7: memref<1x128xf32, #tpu.memory_space<vmem>>, %arg8: memref<8x128xf32, #tpu.memory_space<vmem>>, %arg9: memref<64x128xf32, #tpu.memory_space<vmem>>) attributes {dimension_semantics = [], scalar_prefetch = 0 : i64, scratch_operands = 1 : i64, tpu.core_type = #tpu.core_type<tc>} {
    %c0 = arith.constant 0 : index
    %c0_0 = arith.constant 0 : index
    %0 = vector.load %arg0[%c0, %c0_0] : memref<64x32xf32, #tpu.memory_space<vmem>>, vector<64x32xf32>
    %c0_1 = arith.constant 0 : index
    %c0_2 = arith.constant 0 : index
    %1 = vector.load %arg1[%c0_1, %c0_2] : memref<32x128xf32, #tpu.memory_space<vmem>>, vector<32x128xf32>
    %cst = arith.constant dense<0.000000e+00> : vector<64x128xf32>
    %2 = tpu.matmul %0, %1, %cst {dimension_numbers = #tpu.dot_dimension_numbers<[1], [0], [0], [1], [0, 0, 1, 1], [], []>} : vector<64x32xf32>, vector<32x128xf32>, vector<64x128xf32> -> vector<64x128xf32>
    %c0_3 = arith.constant 0 : index
    %c0_4 = arith.constant 0 : index
    %3 = vector.load %arg3[%c0_3, %c0_4] : memref<1x128xf32, #tpu.memory_space<vmem>>, vector<1x128xf32>
    %4 = vector.broadcast %3 : vector<1x128xf32> to vector<64x128xf32>
    %5 = arith.addf %2, %4 : vector<64x128xf32>
    %c0_5 = arith.constant 0 : index
    %c0_6 = arith.constant 0 : index
    %6 = vector.load %arg9[%c0_5, %c0_6] : memref<64x128xf32, #tpu.memory_space<vmem>>, vector<64x128xf32>
    tpu.vector_store %arg9[%c0_5, %c0_6], %5 {strides = array<i32>} : memref<64x128xf32, #tpu.memory_space<vmem>>, vector<64x128xf32>,
    %c0_7 = arith.constant 0 : index
    %c0_8 = arith.constant 0 : index
    %7 = vector.load %arg2[%c0_7, %c0_8] : memref<32x128xf32, #tpu.memory_space<vmem>>, vector<32x128xf32>
    %c0_9 = arith.constant 0 : index
    %c0_10 = arith.constant 0 : index
    %8 = vector.load %arg4[%c0_9, %c0_10] : memref<64x128xf32, #tpu.memory_space<vmem>>, vector<64x128xf32>
    %c0_11 = arith.constant 0 : index
    %c0_12 = arith.constant 0 : index
    %9 = vector.load %arg5[%c0_11, %c0_12] : memref<1x128xf32, #tpu.memory_space<vmem>>, vector<1x128xf32>
    %10 = vector.shape_cast %9 : vector<1x128xf32> to vector<1x128xf32>
    %11 = vector.broadcast %10 : vector<1x128xf32> to vector<8x128xf32>
    %cst_13 = arith.constant 0.000000e+00 : f32
    %12 = vector.broadcast %cst_13 : f32 to vector<8x32xf32>
    %cst_14 = arith.constant 0.000000e+00 : f32
    %13 = vector.broadcast %cst_14 : f32 to vector<8x32xf32>
    %cst_15 = arith.constant 0.000000e+00 : f32
    %14 = vector.broadcast %cst_15 : f32 to vector<8x32xf32>
    %cst_16 = arith.constant 0.000000e+00 : f32
    %15 = vector.broadcast %cst_16 : f32 to vector<8x32xf32>
    %c0_i32 = arith.constant 0 : i32
    %c8_i32 = arith.constant 8 : i32
    %16 = arith.muli %c0_i32, %c8_i32 : i32
    %17 = tpu.assume_multiple %16, 8 : i32
    %18 = arith.index_cast %17 : i32 to index
    %c0_17 = arith.constant 0 : index
    %19 = vector.load %arg9[%18, %c0_17] : memref<64x128xf32, #tpu.memory_space<vmem>>, vector<8x128xf32>
    %cst_18 = arith.constant dense<0.000000e+00> : vector<8x128xf32>
    %20 = tpu.matmul %12, %7, %cst_18 {dimension_numbers = #tpu.dot_dimension_numbers<[1], [0], [0], [1], [0, 0, 1, 1], [], []>} : vector<8x32xf32>, vector<32x128xf32>, vector<8x128xf32> -> vector<8x128xf32>
    %21 = arith.addf %19, %20 : vector<8x128xf32>
    %22 = arith.negf %21 : vector<8x128xf32>
    %23 = math.exp %22 : vector<8x128xf32>
    %cst_19 = arith.constant 1.000000e+00 : f32
    %24 = vector.broadcast %cst_19 : f32 to vector<8x128xf32>
    %25 = arith.addf %24, %23 : vector<8x128xf32>
    %26 = arith.divf %24, %25 : vector<8x128xf32>
    %27 = math.tanh %21 : vector<8x128xf32>
    %28 = vector.extract_strided_slice %26 {offsets = [0, 0], sizes = [8, 32], strides = [1, 1]} : vector<8x128xf32> to vector<8x32xf32>
    %29 = vector.extract_strided_slice %26 {offsets = [0, 32], sizes = [8, 32], strides = [1, 1]} : vector<8x128xf32> to vector<8x32xf32>
    %30 = vector.extract_strided_slice %26 {offsets = [0, 96], sizes = [8, 32], strides = [1, 1]} : vector<8x128xf32> to vector<8x32xf32>
    %31 = vector.extract_strided_slice %27 {offsets = [0, 64], sizes = [8, 32], strides = [1, 1]} : vector<8x128xf32> to vector<8x32xf32>
    %32 = arith.mulf %29, %14 : vector<8x32xf32>
    %33 = arith.mulf %28, %31 : vector<8x32xf32>
    %34 = arith.addf %32, %33 : vector<8x32xf32>
    %35 = math.tanh %34 : vector<8x32xf32>
    %36 = arith.mulf %30, %35 : vector<8x32xf32>
    %37 = tpu.concatenate %36, %13 in 1 : vector<8x32xf32>, vector<8x32xf32> -> vector<8x64xf32>
    %cst_20 = arith.constant dense<0.000000e+00> : vector<8x128xf32>
    %38 = tpu.matmul %37, %8, %cst_20 {dimension_numbers = #tpu.dot_dimension_numbers<[1], [0], [0], [1], [0, 0, 1, 1], [], []>} : vector<8x64xf32>, vector<64x128xf32>, vector<8x128xf32> -> vector<8x128xf32>
    %39 = arith.addf %38, %11 : vector<8x128xf32>
    %40 = arith.negf %39 : vector<8x128xf32>
    %41 = math.exp %40 : vector<8x128xf32>
    %cst_21 = arith.constant 1.000000e+00 : f32
    %42 = vector.broadcast %cst_21 : f32 to vector<8x128xf32>
    %43 = arith.addf %42, %41 : vector<8x128xf32>
    %44 = arith.divf %42, %43 : vector<8x128xf32>
    %45 = math.tanh %39 : vector<8x128xf32>
    %46 = vector.extract_strided_slice %44 {offsets = [0, 0], sizes = [8, 32], strides = [1, 1]} : vector<8x128xf32> to vector<8x32xf32>
    %47 = vector.extract_strided_slice %44 {offsets = [0, 32], sizes = [8, 32], strides = [1, 1]} : vector<8x128xf32> to vector<8x32xf32>
    %48 = vector.extract_strided_slice %44 {offsets = [0, 96], sizes = [8, 32], strides = [1, 1]} : vector<8x128xf32> to vector<8x32xf32>
    %49 = vector.extract_strided_slice %45 {offsets = [0, 64], sizes = [8, 32], strides = [1, 1]} : vector<8x128xf32> to vector<8x32xf32>
    %50 = arith.mulf %47, %15 : vector<8x32xf32>
    %51 = arith.mulf %46, %49 : vector<8x32xf32>
    %52 = arith.addf %50, %51 : vector<8x32xf32>
    %53 = math.tanh %52 : vector<8x32xf32>
    %54 = arith.mulf %48, %53 : vector<8x32xf32>
    %c1_i32 = arith.constant 1 : i32
    %c8_i32_22 = arith.constant 8 : i32
    %55 = arith.muli %c1_i32, %c8_i32_22 : i32
    %56 = tpu.assume_multiple %55, 8 : i32
    %57 = arith.index_cast %56 : i32 to index
    %c0_23 = arith.constant 0 : index
    %58 = vector.load %arg9[%57, %c0_23] : memref<64x128xf32, #tpu.memory_space<vmem>>, vector<8x128xf32>
    %cst_24 = arith.constant dense<0.000000e+00> : vector<8x128xf32>
    %59 = tpu.matmul %36, %7, %cst_24 {dimension_numbers = #tpu.dot_dimension_numbers<[1], [0], [0], [1], [0, 0, 1, 1], [], []>} : vector<8x32xf32>, vector<32x128xf32>, vector<8x128xf32> -> vector<8x128xf32>
    %60 = arith.addf %58, %59 : vector<8x128xf32>
    %61 = arith.negf %60 : vector<8x128xf32>
    %62 = math.exp %61 : vector<8x128xf32>
    %cst_25 = arith.constant 1.000000e+00 : f32
    %63 = vector.broadcast %cst_25 : f32 to vector<8x128xf32>
    %64 = arith.addf %63, %62 : vector<8x128xf32>
    %65 = arith.divf %63, %64 : vector<8x128xf32>
    %66 = math.tanh %60 : vector<8x128xf32>
    %67 = vector.extract_strided_slice %65 {offsets = [0, 0], sizes = [8, 32], strides = [1, 1]} : vector<8x128xf32> to vector<8x32xf32>
    %68 = vector.extract_strided_slice %65 {offsets = [0, 32], sizes = [8, 32], strides = [1, 1]} : vector<8x128xf32> to vector<8x32xf32>
    %69 = vector.extract_strided_slice %65 {offsets = [0, 96], sizes = [8, 32], strides = [1, 1]} : vector<8x128xf32> to vector<8x32xf32>
    %70 = vector.extract_strided_slice %66 {offsets = [0, 64], sizes = [8, 32], strides = [1, 1]} : vector<8x128xf32> to vector<8x32xf32>
    %71 = arith.mulf %68, %34 : vector<8x32xf32>
    %72 = arith.mulf %67, %70 : vector<8x32xf32>
    %73 = arith.addf %71, %72 : vector<8x32xf32>
    %74 = math.tanh %73 : vector<8x32xf32>
    %75 = arith.mulf %69, %74 : vector<8x32xf32>
    %76 = tpu.concatenate %75, %54 in 1 : vector<8x32xf32>, vector<8x32xf32> -> vector<8x64xf32>
    %cst_26 = arith.constant dense<0.000000e+00> : vector<8x128xf32>
    %77 = tpu.matmul %76, %8, %cst_26 {dimension_numbers = #tpu.dot_dimension_numbers<[1], [0], [0], [1], [0, 0, 1, 1], [], []>} : vector<8x64xf32>, vector<64x128xf32>, vector<8x128xf32> -> vector<8x128xf32>
    %78 = arith.addf %77, %11 : vector<8x128xf32>
    %79 = arith.negf %78 : vector<8x128xf32>
    %80 = math.exp %79 : vector<8x128xf32>
    %cst_27 = arith.constant 1.000000e+00 : f32
    %81 = vector.broadcast %cst_27 : f32 to vector<8x128xf32>
    %82 = arith.addf %81, %80 : vector<8x128xf32>
    %83 = arith.divf %81, %82 : vector<8x128xf32>
    %84 = math.tanh %78 : vector<8x128xf32>
    %85 = vector.extract_strided_slice %83 {offsets = [0, 0], sizes = [8, 32], strides = [1, 1]} : vector<8x128xf32> to vector<8x32xf32>
    %86 = vector.extract_strided_slice %83 {offsets = [0, 32], sizes = [8, 32], strides = [1, 1]} : vector<8x128xf32> to vector<8x32xf32>
    %87 = vector.extract_strided_slice %83 {offsets = [0, 96], sizes = [8, 32], strides = [1, 1]} : vector<8x128xf32> to vector<8x32xf32>
    %88 = vector.extract_strided_slice %84 {offsets = [0, 64], sizes = [8, 32], strides = [1, 1]} : vector<8x128xf32> to vector<8x32xf32>
    %89 = arith.mulf %86, %52 : vector<8x32xf32>
    %90 = arith.mulf %85, %88 : vector<8x32xf32>
    %91 = arith.addf %89, %90 : vector<8x32xf32>
    %92 = math.tanh %91 : vector<8x32xf32>
    %93 = arith.mulf %87, %92 : vector<8x32xf32>
    %c2_i32 = arith.constant 2 : i32
    %c8_i32_28 = arith.constant 8 : i32
    %94 = arith.muli %c2_i32, %c8_i32_28 : i32
    %95 = tpu.assume_multiple %94, 8 : i32
    %96 = arith.index_cast %95 : i32 to index
    %c0_29 = arith.constant 0 : index
    %97 = vector.load %arg9[%96, %c0_29] : memref<64x128xf32, #tpu.memory_space<vmem>>, vector<8x128xf32>
    %cst_30 = arith.constant dense<0.000000e+00> : vector<8x128xf32>
    %98 = tpu.matmul %75, %7, %cst_30 {dimension_numbers = #tpu.dot_dimension_numbers<[1], [0], [0], [1], [0, 0, 1, 1], [], []>} : vector<8x32xf32>, vector<32x128xf32>, vector<8x128xf32> -> vector<8x128xf32>
    %99 = arith.addf %97, %98 : vector<8x128xf32>
    %100 = arith.negf %99 : vector<8x128xf32>
    %101 = math.exp %100 : vector<8x128xf32>
    %cst_31 = arith.constant 1.000000e+00 : f32
    %102 = vector.broadcast %cst_31 : f32 to vector<8x128xf32>
    %103 = arith.addf %102, %101 : vector<8x128xf32>
    %104 = arith.divf %102, %103 : vector<8x128xf32>
    %105 = math.tanh %99 : vector<8x128xf32>
    %106 = vector.extract_strided_slice %104 {offsets = [0, 0], sizes = [8, 32], strides = [1, 1]} : vector<8x128xf32> to vector<8x32xf32>
    %107 = vector.extract_strided_slice %104 {offsets = [0, 32], sizes = [8, 32], strides = [1, 1]} : vector<8x128xf32> to vector<8x32xf32>
    %108 = vector.extract_strided_slice %104 {offsets = [0, 96], sizes = [8, 32], strides = [1, 1]} : vector<8x128xf32> to vector<8x32xf32>
    %109 = vector.extract_strided_slice %105 {offsets = [0, 64], sizes = [8, 32], strides = [1, 1]} : vector<8x128xf32> to vector<8x32xf32>
    %110 = arith.mulf %107, %73 : vector<8x32xf32>
    %111 = arith.mulf %106, %109 : vector<8x32xf32>
    %112 = arith.addf %110, %111 : vector<8x32xf32>
    %113 = math.tanh %112 : vector<8x32xf32>
    %114 = arith.mulf %108, %113 : vector<8x32xf32>
    %115 = tpu.concatenate %114, %93 in 1 : vector<8x32xf32>, vector<8x32xf32> -> vector<8x64xf32>
    %cst_32 = arith.constant dense<0.000000e+00> : vector<8x128xf32>
    %116 = tpu.matmul %115, %8, %cst_32 {dimension_numbers = #tpu.dot_dimension_numbers<[1], [0], [0], [1], [0, 0, 1, 1], [], []>} : vector<8x64xf32>, vector<64x128xf32>, vector<8x128xf32> -> vector<8x128xf32>
    %117 = arith.addf %116, %11 : vector<8x128xf32>
    %118 = arith.negf %117 : vector<8x128xf32>
    %119 = math.exp %118 : vector<8x128xf32>
    %cst_33 = arith.constant 1.000000e+00 : f32
    %120 = vector.broadcast %cst_33 : f32 to vector<8x128xf32>
    %121 = arith.addf %120, %119 : vector<8x128xf32>
    %122 = arith.divf %120, %121 : vector<8x128xf32>
    %123 = math.tanh %117 : vector<8x128xf32>
    %124 = vector.extract_strided_slice %122 {offsets = [0, 0], sizes = [8, 32], strides = [1, 1]} : vector<8x128xf32> to vector<8x32xf32>
    %125 = vector.extract_strided_slice %122 {offsets = [0, 32], sizes = [8, 32], strides = [1, 1]} : vector<8x128xf32> to vector<8x32xf32>
    %126 = vector.extract_strided_slice %122 {offsets = [0, 96], sizes = [8, 32], strides = [1, 1]} : vector<8x128xf32> to vector<8x32xf32>
    %127 = vector.extract_strided_slice %123 {offsets = [0, 64], sizes = [8, 32], strides = [1, 1]} : vector<8x128xf32> to vector<8x32xf32>
    %128 = arith.mulf %125, %91 : vector<8x32xf32>
    %129 = arith.mulf %124, %127 : vector<8x32xf32>
    %130 = arith.addf %128, %129 : vector<8x32xf32>
    %131 = math.tanh %130 : vector<8x32xf32>
    %132 = arith.mulf %126, %131 : vector<8x32xf32>
    %c3_i32 = arith.constant 3 : i32
    %c8_i32_34 = arith.constant 8 : i32
    %133 = arith.muli %c3_i32, %c8_i32_34 : i32
    %134 = tpu.assume_multiple %133, 8 : i32
    %135 = arith.index_cast %134 : i32 to index
    %c0_35 = arith.constant 0 : index
    %136 = vector.load %arg9[%135, %c0_35] : memref<64x128xf32, #tpu.memory_space<vmem>>, vector<8x128xf32>
    %cst_36 = arith.constant dense<0.000000e+00> : vector<8x128xf32>
    %137 = tpu.matmul %114, %7, %cst_36 {dimension_numbers = #tpu.dot_dimension_numbers<[1], [0], [0], [1], [0, 0, 1, 1], [], []>} : vector<8x32xf32>, vector<32x128xf32>, vector<8x128xf32> -> vector<8x128xf32>
    %138 = arith.addf %136, %137 : vector<8x128xf32>
    %139 = arith.negf %138 : vector<8x128xf32>
    %140 = math.exp %139 : vector<8x128xf32>
    %cst_37 = arith.constant 1.000000e+00 : f32
    %141 = vector.broadcast %cst_37 : f32 to vector<8x128xf32>
    %142 = arith.addf %141, %140 : vector<8x128xf32>
    %143 = arith.divf %141, %142 : vector<8x128xf32>
    %144 = math.tanh %138 : vector<8x128xf32>
    %145 = vector.extract_strided_slice %143 {offsets = [0, 0], sizes = [8, 32], strides = [1, 1]} : vector<8x128xf32> to vector<8x32xf32>
    %146 = vector.extract_strided_slice %143 {offsets = [0, 32], sizes = [8, 32], strides = [1, 1]} : vector<8x128xf32> to vector<8x32xf32>
    %147 = vector.extract_strided_slice %143 {offsets = [0, 96], sizes = [8, 32], strides = [1, 1]} : vector<8x128xf32> to vector<8x32xf32>
    %148 = vector.extract_strided_slice %144 {offsets = [0, 64], sizes = [8, 32], strides = [1, 1]} : vector<8x128xf32> to vector<8x32xf32>
    %149 = arith.mulf %146, %112 : vector<8x32xf32>
    %150 = arith.mulf %145, %148 : vector<8x32xf32>
    %151 = arith.addf %149, %150 : vector<8x32xf32>
    %152 = math.tanh %151 : vector<8x32xf32>
    %153 = arith.mulf %147, %152 : vector<8x32xf32>
    %154 = tpu.concatenate %153, %132 in 1 : vector<8x32xf32>, vector<8x32xf32> -> vector<8x64xf32>
    %cst_38 = arith.constant dense<0.000000e+00> : vector<8x128xf32>
    %155 = tpu.matmul %154, %8, %cst_38 {dimension_numbers = #tpu.dot_dimension_numbers<[1], [0], [0], [1], [0, 0, 1, 1], [], []>} : vector<8x64xf32>, vector<64x128xf32>, vector<8x128xf32> -> vector<8x128xf32>
    %156 = arith.addf %155, %11 : vector<8x128xf32>
    %157 = arith.negf %156 : vector<8x128xf32>
    %158 = math.exp %157 : vector<8x128xf32>
    %cst_39 = arith.constant 1.000000e+00 : f32
    %159 = vector.broadcast %cst_39 : f32 to vector<8x128xf32>
    %160 = arith.addf %159, %158 : vector<8x128xf32>
    %161 = arith.divf %159, %160 : vector<8x128xf32>
    %162 = math.tanh %156 : vector<8x128xf32>
    %163 = vector.extract_strided_slice %161 {offsets = [0, 0], sizes = [8, 32], strides = [1, 1]} : vector<8x128xf32> to vector<8x32xf32>
    %164 = vector.extract_strided_slice %161 {offsets = [0, 32], sizes = [8, 32], strides = [1, 1]} : vector<8x128xf32> to vector<8x32xf32>
    %165 = vector.extract_strided_slice %161 {offsets = [0, 96], sizes = [8, 32], strides = [1, 1]} : vector<8x128xf32> to vector<8x32xf32>
    %166 = vector.extract_strided_slice %162 {offsets = [0, 64], sizes = [8, 32], strides = [1, 1]} : vector<8x128xf32> to vector<8x32xf32>
    %167 = arith.mulf %164, %130 : vector<8x32xf32>
    %168 = arith.mulf %163, %166 : vector<8x32xf32>
    %169 = arith.addf %167, %168 : vector<8x32xf32>
    %170 = math.tanh %169 : vector<8x32xf32>
    %171 = arith.mulf %165, %170 : vector<8x32xf32>
    %c4_i32 = arith.constant 4 : i32
    %c8_i32_40 = arith.constant 8 : i32
    %172 = arith.muli %c4_i32, %c8_i32_40 : i32
    %173 = tpu.assume_multiple %172, 8 : i32
    %174 = arith.index_cast %173 : i32 to index
    %c0_41 = arith.constant 0 : index
    %175 = vector.load %arg9[%174, %c0_41] : memref<64x128xf32, #tpu.memory_space<vmem>>, vector<8x128xf32>
    %cst_42 = arith.constant dense<0.000000e+00> : vector<8x128xf32>
    %176 = tpu.matmul %153, %7, %cst_42 {dimension_numbers = #tpu.dot_dimension_numbers<[1], [0], [0], [1], [0, 0, 1, 1], [], []>} : vector<8x32xf32>, vector<32x128xf32>, vector<8x128xf32> -> vector<8x128xf32>
    %177 = arith.addf %175, %176 : vector<8x128xf32>
    %178 = arith.negf %177 : vector<8x128xf32>
    %179 = math.exp %178 : vector<8x128xf32>
    %cst_43 = arith.constant 1.000000e+00 : f32
    %180 = vector.broadcast %cst_43 : f32 to vector<8x128xf32>
    %181 = arith.addf %180, %179 : vector<8x128xf32>
    %182 = arith.divf %180, %181 : vector<8x128xf32>
    %183 = math.tanh %177 : vector<8x128xf32>
    %184 = vector.extract_strided_slice %182 {offsets = [0, 0], sizes = [8, 32], strides = [1, 1]} : vector<8x128xf32> to vector<8x32xf32>
    %185 = vector.extract_strided_slice %182 {offsets = [0, 32], sizes = [8, 32], strides = [1, 1]} : vector<8x128xf32> to vector<8x32xf32>
    %186 = vector.extract_strided_slice %182 {offsets = [0, 96], sizes = [8, 32], strides = [1, 1]} : vector<8x128xf32> to vector<8x32xf32>
    %187 = vector.extract_strided_slice %183 {offsets = [0, 64], sizes = [8, 32], strides = [1, 1]} : vector<8x128xf32> to vector<8x32xf32>
    %188 = arith.mulf %185, %151 : vector<8x32xf32>
    %189 = arith.mulf %184, %187 : vector<8x32xf32>
    %190 = arith.addf %188, %189 : vector<8x32xf32>
    %191 = math.tanh %190 : vector<8x32xf32>
    %192 = arith.mulf %186, %191 : vector<8x32xf32>
    %193 = tpu.concatenate %192, %171 in 1 : vector<8x32xf32>, vector<8x32xf32> -> vector<8x64xf32>
    %cst_44 = arith.constant dense<0.000000e+00> : vector<8x128xf32>
    %194 = tpu.matmul %193, %8, %cst_44 {dimension_numbers = #tpu.dot_dimension_numbers<[1], [0], [0], [1], [0, 0, 1, 1], [], []>} : vector<8x64xf32>, vector<64x128xf32>, vector<8x128xf32> -> vector<8x128xf32>
    %195 = arith.addf %194, %11 : vector<8x128xf32>
    %196 = arith.negf %195 : vector<8x128xf32>
    %197 = math.exp %196 : vector<8x128xf32>
    %cst_45 = arith.constant 1.000000e+00 : f32
    %198 = vector.broadcast %cst_45 : f32 to vector<8x128xf32>
    %199 = arith.addf %198, %197 : vector<8x128xf32>
    %200 = arith.divf %198, %199 : vector<8x128xf32>
    %201 = math.tanh %195 : vector<8x128xf32>
    %202 = vector.extract_strided_slice %200 {offsets = [0, 0], sizes = [8, 32], strides = [1, 1]} : vector<8x128xf32> to vector<8x32xf32>
    %203 = vector.extract_strided_slice %200 {offsets = [0, 32], sizes = [8, 32], strides = [1, 1]} : vector<8x128xf32> to vector<8x32xf32>
    %204 = vector.extract_strided_slice %200 {offsets = [0, 96], sizes = [8, 32], strides = [1, 1]} : vector<8x128xf32> to vector<8x32xf32>
    %205 = vector.extract_strided_slice %201 {offsets = [0, 64], sizes = [8, 32], strides = [1, 1]} : vector<8x128xf32> to vector<8x32xf32>
    %206 = arith.mulf %203, %169 : vector<8x32xf32>
    %207 = arith.mulf %202, %205 : vector<8x32xf32>
    %208 = arith.addf %206, %207 : vector<8x32xf32>
    %209 = math.tanh %208 : vector<8x32xf32>
    %210 = arith.mulf %204, %209 : vector<8x32xf32>
    %c5_i32 = arith.constant 5 : i32
    %c8_i32_46 = arith.constant 8 : i32
    %211 = arith.muli %c5_i32, %c8_i32_46 : i32
    %212 = tpu.assume_multiple %211, 8 : i32
    %213 = arith.index_cast %212 : i32 to index
    %c0_47 = arith.constant 0 : index
    %214 = vector.load %arg9[%213, %c0_47] : memref<64x128xf32, #tpu.memory_space<vmem>>, vector<8x128xf32>
    %cst_48 = arith.constant dense<0.000000e+00> : vector<8x128xf32>
    %215 = tpu.matmul %192, %7, %cst_48 {dimension_numbers = #tpu.dot_dimension_numbers<[1], [0], [0], [1], [0, 0, 1, 1], [], []>} : vector<8x32xf32>, vector<32x128xf32>, vector<8x128xf32> -> vector<8x128xf32>
    %216 = arith.addf %214, %215 : vector<8x128xf32>
    %217 = arith.negf %216 : vector<8x128xf32>
    %218 = math.exp %217 : vector<8x128xf32>
    %cst_49 = arith.constant 1.000000e+00 : f32
    %219 = vector.broadcast %cst_49 : f32 to vector<8x128xf32>
    %220 = arith.addf %219, %218 : vector<8x128xf32>
    %221 = arith.divf %219, %220 : vector<8x128xf32>
    %222 = math.tanh %216 : vector<8x128xf32>
    %223 = vector.extract_strided_slice %221 {offsets = [0, 0], sizes = [8, 32], strides = [1, 1]} : vector<8x128xf32> to vector<8x32xf32>
    %224 = vector.extract_strided_slice %221 {offsets = [0, 32], sizes = [8, 32], strides = [1, 1]} : vector<8x128xf32> to vector<8x32xf32>
    %225 = vector.extract_strided_slice %221 {offsets = [0, 96], sizes = [8, 32], strides = [1, 1]} : vector<8x128xf32> to vector<8x32xf32>
    %226 = vector.extract_strided_slice %222 {offsets = [0, 64], sizes = [8, 32], strides = [1, 1]} : vector<8x128xf32> to vector<8x32xf32>
    %227 = arith.mulf %224, %190 : vector<8x32xf32>
    %228 = arith.mulf %223, %226 : vector<8x32xf32>
    %229 = arith.addf %227, %228 : vector<8x32xf32>
    %230 = math.tanh %229 : vector<8x32xf32>
    %231 = arith.mulf %225, %230 : vector<8x32xf32>
    %232 = tpu.concatenate %231, %210 in 1 : vector<8x32xf32>, vector<8x32xf32> -> vector<8x64xf32>
    %cst_50 = arith.constant dense<0.000000e+00> : vector<8x128xf32>
    %233 = tpu.matmul %232, %8, %cst_50 {dimension_numbers = #tpu.dot_dimension_numbers<[1], [0], [0], [1], [0, 0, 1, 1], [], []>} : vector<8x64xf32>, vector<64x128xf32>, vector<8x128xf32> -> vector<8x128xf32>
    %234 = arith.addf %233, %11 : vector<8x128xf32>
    %235 = arith.negf %234 : vector<8x128xf32>
    %236 = math.exp %235 : vector<8x128xf32>
    %cst_51 = arith.constant 1.000000e+00 : f32
    %237 = vector.broadcast %cst_51 : f32 to vector<8x128xf32>
    %238 = arith.addf %237, %236 : vector<8x128xf32>
    %239 = arith.divf %237, %238 : vector<8x128xf32>
    %240 = math.tanh %234 : vector<8x128xf32>
    %241 = vector.extract_strided_slice %239 {offsets = [0, 0], sizes = [8, 32], strides = [1, 1]} : vector<8x128xf32> to vector<8x32xf32>
    %242 = vector.extract_strided_slice %239 {offsets = [0, 32], sizes = [8, 32], strides = [1, 1]} : vector<8x128xf32> to vector<8x32xf32>
    %243 = vector.extract_strided_slice %239 {offsets = [0, 96], sizes = [8, 32], strides = [1, 1]} : vector<8x128xf32> to vector<8x32xf32>
    %244 = vector.extract_strided_slice %240 {offsets = [0, 64], sizes = [8, 32], strides = [1, 1]} : vector<8x128xf32> to vector<8x32xf32>
    %245 = arith.mulf %242, %208 : vector<8x32xf32>
    %246 = arith.mulf %241, %244 : vector<8x32xf32>
    %247 = arith.addf %245, %246 : vector<8x32xf32>
    %248 = math.tanh %247 : vector<8x32xf32>
    %249 = arith.mulf %243, %248 : vector<8x32xf32>
    %c6_i32 = arith.constant 6 : i32
    %c8_i32_52 = arith.constant 8 : i32
    %250 = arith.muli %c6_i32, %c8_i32_52 : i32
    %251 = tpu.assume_multiple %250, 8 : i32
    %252 = arith.index_cast %251 : i32 to index
    %c0_53 = arith.constant 0 : index
    %253 = vector.load %arg9[%252, %c0_53] : memref<64x128xf32, #tpu.memory_space<vmem>>, vector<8x128xf32>
    %cst_54 = arith.constant dense<0.000000e+00> : vector<8x128xf32>
    %254 = tpu.matmul %231, %7, %cst_54 {dimension_numbers = #tpu.dot_dimension_numbers<[1], [0], [0], [1], [0, 0, 1, 1], [], []>} : vector<8x32xf32>, vector<32x128xf32>, vector<8x128xf32> -> vector<8x128xf32>
    %255 = arith.addf %253, %254 : vector<8x128xf32>
    %256 = arith.negf %255 : vector<8x128xf32>
    %257 = math.exp %256 : vector<8x128xf32>
    %cst_55 = arith.constant 1.000000e+00 : f32
    %258 = vector.broadcast %cst_55 : f32 to vector<8x128xf32>
    %259 = arith.addf %258, %257 : vector<8x128xf32>
    %260 = arith.divf %258, %259 : vector<8x128xf32>
    %261 = math.tanh %255 : vector<8x128xf32>
    %262 = vector.extract_strided_slice %260 {offsets = [0, 0], sizes = [8, 32], strides = [1, 1]} : vector<8x128xf32> to vector<8x32xf32>
    %263 = vector.extract_strided_slice %260 {offsets = [0, 32], sizes = [8, 32], strides = [1, 1]} : vector<8x128xf32> to vector<8x32xf32>
    %264 = vector.extract_strided_slice %260 {offsets = [0, 96], sizes = [8, 32], strides = [1, 1]} : vector<8x128xf32> to vector<8x32xf32>
    %265 = vector.extract_strided_slice %261 {offsets = [0, 64], sizes = [8, 32], strides = [1, 1]} : vector<8x128xf32> to vector<8x32xf32>
    %266 = arith.mulf %263, %229 : vector<8x32xf32>
    %267 = arith.mulf %262, %265 : vector<8x32xf32>
    %268 = arith.addf %266, %267 : vector<8x32xf32>
    %269 = math.tanh %268 : vector<8x32xf32>
    %270 = arith.mulf %264, %269 : vector<8x32xf32>
    %271 = tpu.concatenate %270, %249 in 1 : vector<8x32xf32>, vector<8x32xf32> -> vector<8x64xf32>
    %cst_56 = arith.constant dense<0.000000e+00> : vector<8x128xf32>
    %272 = tpu.matmul %271, %8, %cst_56 {dimension_numbers = #tpu.dot_dimension_numbers<[1], [0], [0], [1], [0, 0, 1, 1], [], []>} : vector<8x64xf32>, vector<64x128xf32>, vector<8x128xf32> -> vector<8x128xf32>
    %273 = arith.addf %272, %11 : vector<8x128xf32>
    %274 = arith.negf %273 : vector<8x128xf32>
    %275 = math.exp %274 : vector<8x128xf32>
    %cst_57 = arith.constant 1.000000e+00 : f32
    %276 = vector.broadcast %cst_57 : f32 to vector<8x128xf32>
    %277 = arith.addf %276, %275 : vector<8x128xf32>
    %278 = arith.divf %276, %277 : vector<8x128xf32>
    %279 = math.tanh %273 : vector<8x128xf32>
    %280 = vector.extract_strided_slice %278 {offsets = [0, 0], sizes = [8, 32], strides = [1, 1]} : vector<8x128xf32> to vector<8x32xf32>
    %281 = vector.extract_strided_slice %278 {offsets = [0, 32], sizes = [8, 32], strides = [1, 1]} : vector<8x128xf32> to vector<8x32xf32>
    %282 = vector.extract_strided_slice %278 {offsets = [0, 96], sizes = [8, 32], strides = [1, 1]} : vector<8x128xf32> to vector<8x32xf32>
    %283 = vector.extract_strided_slice %279 {offsets = [0, 64], sizes = [8, 32], strides = [1, 1]} : vector<8x128xf32> to vector<8x32xf32>
    %284 = arith.mulf %281, %247 : vector<8x32xf32>
    %285 = arith.mulf %280, %283 : vector<8x32xf32>
    %286 = arith.addf %284, %285 : vector<8x32xf32>
    %287 = math.tanh %286 : vector<8x32xf32>
    %288 = arith.mulf %282, %287 : vector<8x32xf32>
    %c7_i32 = arith.constant 7 : i32
    %c8_i32_58 = arith.constant 8 : i32
    %289 = arith.muli %c7_i32, %c8_i32_58 : i32
    %290 = tpu.assume_multiple %289, 8 : i32
    %291 = arith.index_cast %290 : i32 to index
    %c0_59 = arith.constant 0 : index
    %292 = vector.load %arg9[%291, %c0_59] : memref<64x128xf32, #tpu.memory_space<vmem>>, vector<8x128xf32>
    %cst_60 = arith.constant dense<0.000000e+00> : vector<8x128xf32>
    %293 = tpu.matmul %270, %7, %cst_60 {dimension_numbers = #tpu.dot_dimension_numbers<[1], [0], [0], [1], [0, 0, 1, 1], [], []>} : vector<8x32xf32>, vector<32x128xf32>, vector<8x128xf32> -> vector<8x128xf32>
    %294 = arith.addf %292, %293 : vector<8x128xf32>
    %295 = arith.negf %294 : vector<8x128xf32>
    %296 = math.exp %295 : vector<8x128xf32>
    %cst_61 = arith.constant 1.000000e+00 : f32
    %297 = vector.broadcast %cst_61 : f32 to vector<8x128xf32>
    %298 = arith.addf %297, %296 : vector<8x128xf32>
    %299 = arith.divf %297, %298 : vector<8x128xf32>
    %300 = math.tanh %294 : vector<8x128xf32>
    %301 = vector.extract_strided_slice %299 {offsets = [0, 0], sizes = [8, 32], strides = [1, 1]} : vector<8x128xf32> to vector<8x32xf32>
    %302 = vector.extract_strided_slice %299 {offsets = [0, 32], sizes = [8, 32], strides = [1, 1]} : vector<8x128xf32> to vector<8x32xf32>
    %303 = vector.extract_strided_slice %299 {offsets = [0, 96], sizes = [8, 32], strides = [1, 1]} : vector<8x128xf32> to vector<8x32xf32>
    %304 = vector.extract_strided_slice %300 {offsets = [0, 64], sizes = [8, 32], strides = [1, 1]} : vector<8x128xf32> to vector<8x32xf32>
    %305 = arith.mulf %302, %268 : vector<8x32xf32>
    %306 = arith.mulf %301, %304 : vector<8x32xf32>
    %307 = arith.addf %305, %306 : vector<8x32xf32>
    %308 = math.tanh %307 : vector<8x32xf32>
    %309 = arith.mulf %303, %308 : vector<8x32xf32>
    %310 = tpu.concatenate %309, %288 in 1 : vector<8x32xf32>, vector<8x32xf32> -> vector<8x64xf32>
    %cst_62 = arith.constant dense<0.000000e+00> : vector<8x128xf32>
    %311 = tpu.matmul %310, %8, %cst_62 {dimension_numbers = #tpu.dot_dimension_numbers<[1], [0], [0], [1], [0, 0, 1, 1], [], []>} : vector<8x64xf32>, vector<64x128xf32>, vector<8x128xf32> -> vector<8x128xf32>
    %312 = arith.addf %311, %11 : vector<8x128xf32>
    %313 = arith.negf %312 : vector<8x128xf32>
    %314 = math.exp %313 : vector<8x128xf32>
    %cst_63 = arith.constant 1.000000e+00 : f32
    %315 = vector.broadcast %cst_63 : f32 to vector<8x128xf32>
    %316 = arith.addf %315, %314 : vector<8x128xf32>
    %317 = arith.divf %315, %316 : vector<8x128xf32>
    %318 = math.tanh %312 : vector<8x128xf32>
    %319 = vector.extract_strided_slice %317 {offsets = [0, 0], sizes = [8, 32], strides = [1, 1]} : vector<8x128xf32> to vector<8x32xf32>
    %320 = vector.extract_strided_slice %317 {offsets = [0, 32], sizes = [8, 32], strides = [1, 1]} : vector<8x128xf32> to vector<8x32xf32>
    %321 = vector.extract_strided_slice %317 {offsets = [0, 96], sizes = [8, 32], strides = [1, 1]} : vector<8x128xf32> to vector<8x32xf32>
    %322 = vector.extract_strided_slice %318 {offsets = [0, 64], sizes = [8, 32], strides = [1, 1]} : vector<8x128xf32> to vector<8x32xf32>
    %323 = arith.mulf %320, %286 : vector<8x32xf32>
    %324 = arith.mulf %319, %322 : vector<8x32xf32>
    %325 = arith.addf %323, %324 : vector<8x32xf32>
    %326 = math.tanh %325 : vector<8x32xf32>
    %327 = arith.mulf %321, %326 : vector<8x32xf32>
    %c8_i32_64 = arith.constant 8 : i32
    %c0_65 = arith.constant 0 : index
    %c0_66 = arith.constant 0 : index
    %328 = vector.load %arg6[%c0_65, %c0_66] : memref<32x128xf32, #tpu.memory_space<vmem>>, vector<32x128xf32>
    %cst_67 = arith.constant dense<0.000000e+00> : vector<8x128xf32>
    %329 = tpu.matmul %327, %328, %cst_67 {dimension_numbers = #tpu.dot_dimension_numbers<[1], [0], [0], [1], [0, 0, 1, 1], [], []>} : vector<8x32xf32>, vector<32x128xf32>, vector<8x128xf32> -> vector<8x128xf32>
    %c0_68 = arith.constant 0 : index
    %c0_69 = arith.constant 0 : index
    %330 = vector.load %arg7[%c0_68, %c0_69] : memref<1x128xf32, #tpu.memory_space<vmem>>, vector<1x128xf32>
    %331 = vector.broadcast %330 : vector<1x128xf32> to vector<8x128xf32>
    %332 = arith.addf %329, %331 : vector<8x128xf32>
    %333 = tpu.iota {dimensions = array<i32: 0>} : vector<8x128xi32>
    %c2_i32_70 = arith.constant 2 : i32
    %334 = vector.broadcast %c2_i32_70 : i32 to vector<8x128xi32>
    %335 = arith.cmpi slt, %333, %334 : vector<8x128xi32>
    %336 = arith.mulf %332, %332 : vector<8x128xf32>
    %cst_71 = arith.constant 0.000000e+00 : f32
    %337 = vector.broadcast %cst_71 : f32 to vector<8x128xf32>
    %338 = arith.select %335, %336, %337 : vector<8x128xi1>, vector<8x128xf32>
    %339 = vector.shape_cast %338 : vector<8x128xf32> to vector<1x8x128xf32>
    %cst_72 = arith.constant dense<0.000000e+00> : vector<1xf32>
    %340 = vector.multi_reduction <add>, %339, %cst_72 [1, 2] : vector<1x8x128xf32> to vector<1xf32>
    %341 = vector.shape_cast %340 : vector<1xf32> to vector<1x1x1xf32>
    %342 = vector.extract %341[0, 0, 0] : f32 from vector<1x1x1xf32>
    %343 = math.rsqrt %342 : f32
    %344 = vector.broadcast %343 : f32 to vector<8x128xf32>
    %345 = arith.mulf %332, %344 : vector<8x128xf32>
    %c0_73 = arith.constant 0 : index
    %c0_74 = arith.constant 0 : index
    %346 = vector.load %arg8[%c0_73, %c0_74] : memref<8x128xf32, #tpu.memory_space<vmem>>, vector<8x128xf32>
    tpu.vector_store %arg8[%c0_73, %c0_74], %345 {strides = array<i32>} : memref<8x128xf32, #tpu.memory_space<vmem>>, vector<8x128xf32>,
    return
  }
}

</mosaic_0001>

<bundles_post_ra>
// kernel: speaker_encoder_forward.1
= control target key start
LH: loop header
LB: loop body
LE: loop exit
PB: predicated region body
PF: predicated region fallthrough
CT: control target
= control target key end

     0   :  { %v2547_v2 = vmov 0.0   ;;  %vm2548_vm0 = vmmov 0   ;;  %vm48_vm1 = vcmask 261120   ;;  %s2549_s26 = smov 64   ;;  %s2550_s27 = smov 32   ;;  %vm309_vm2 = vcmask 523264   ;;  %s3164_s1 = inlined_call_operand.vmem [shape: f32[32,128], index: 1, kind: input, shape index: {}]   ;;  %s3165_s2 = inlined_call_operand.vmem [shape: f32[32,128], index: 2, kind: input, shape index: {}]   ;;  %s3166_s0 = inlined_call_operand.vmem [shape: f32[64,32], index: 0, kind: input, shape index: {}]   ;;  %s3167_s3 = inlined_call_operand.vmem [shape: f32[1,128], index: 3, kind: input, shape index: {}]   ;;  %s3168_s4 = inlined_call_operand.vmem [shape: f32[64,128], index: 4, kind: input, shape index: {}]   ;;  %s3169_s5 = inlined_call_operand.vmem [shape: f32[1,128], index: 5, kind: input, shape index: {}]   ;;  %s3170_s6 = inlined_call_operand.vmem [shape: f32[32,128], index: 6, kind: input, shape index: {}]   ;;  %s3171_s7 = inlined_call_operand.vmem [shape: f32[1,128], index: 7, kind: input, shape index: {}]   ;;  %s3172_s8 = inlined_call_operand.vmem [shape: f32[8,128], index: 8, kind: output, shape index: {}]  }
   0x1   :  { %v40_v0 = vld [vmem:[%s3164_s1 + $0x18] sm:$0xff]  ;;  %v39_v1 = vld [vmem:[%s3164_s1 + $0x10] sm:$0xff]  ;;  %2144 = vmatprep.subr.mxu1 %v2547_v2  ;;  %2152 = vmatprep.mubr.msk.f32.mxu1 %vm2548_vm0, %v2547_v2  ;;  %v38_v5 = vld [vmem:[%s3164_s1 + $0x8] sm:$0xff] }
   0x2   :  { %v2606_v3 = vld [vmem:[%s3165_s2 + $0x18] sm:$0xff]  ;;  %2124 = vmatprep.subr.mxu0 %v40_v0  ;;  %v2614_v4 = vld [vmem:[%s3165_s2 + $0x10] sm:$0xff]  ;;  %v29_v6 = vld [vmem:[%s3166_s0] sm:$0xff] }
   0x3   :  { %2145 = vmatpush3.msra.mxu1 %v2606_v3  ;;  %2125 = vmatpush3.msra.mxu0 %v40_v0  ;;  %v2627_v7 = vld [vmem:[%s3165_s2 + $0x8] sm:$0xff]  ;;  %v37_v8 = vld [vmem:[%s3164_s1] sm:$0xff]  ;;  %v31_v28 = vld [vmem:[%s3166_s0 + $0x10] sm:$0xff] }
   0x4   :  { %2146 = vmatprep.subr.mxu1 %v2547_v2  ;;  %2126 = vmatprep.subr.mxu0 %v39_v1  ;;  %v2637_v9 = vld [vmem:[%s3165_s2] sm:$0xff]  ;;  %v30_v10 = vld [vmem:[%s3166_s0 + $0x8] sm:$0xff]  ;;  %v32_v29 = vld [vmem:[%s3166_s0 + $0x18] sm:$0xff] }
   0x5   :  { %2147 = vmatpush3.msra.mxu1 %v2614_v4  ;;  %2127 = vmatpush3.msra.mxu0 %v39_v1  ;;  %v2664_v13 = vld [vmem:[%s3167_s3] ss:$0 sm:$0xff]  ;;  %v2681_v30 = vld [vmem:[%s3168_s4 + $0x38] sm:$0xff]  ;;  %v2687_v31 = vld [vmem:[%s3168_s4 + $0x30] sm:$0xff] }
   0x6   :  { %2148 = vmatprep.subr.mxu1 %v2547_v2  ;;  %2128 = vmatprep.subr.mxu0 %v38_v5  ;;  %v33_v32 = vld [vmem:[%s3166_s0 + $0x20] sm:$0xff]  ;;  %v2698_v33 = vld [vmem:[%s3168_s4 + $0x28] sm:$0xff]  ;;  %v35_v36 = vld [vmem:[%s3166_s0 + $0x30] sm:$0xff] }
   0x7   :  { %2132 = vmatprep.mubr.msk.f32.mxu0 %vm48_vm1, %v29_v6  ;;  %2129 = vmatpush3.msra.mxu0 %v38_v5  ;;  %v34_v34 = vld [vmem:[%s3166_s0 + $0x28] sm:$0xff]  ;;  %v2709_v35 = vld [vmem:[%s3168_s4 + $0x20] sm:$0xff]  ;;  %v2720_v37 = vld [vmem:[%s3168_s4 + $0x18] sm:$0xff] }
   0x8   :  { %2149 = vmatpush3.msra.mxu1 %v2627_v7  ;;  %2130 = vmatprep.subr.mxu0 %v37_v8  ;;  %v36_v38 = vld [vmem:[%s3166_s0 + $0x38] sm:$0xff]  ;;  %v2732_v40 = vld [vmem:[%s3168_s4 + $0x10] sm:$0xff]  ;;  %v2740_v41 = vld [vmem:[%s3168_s4 + $0x8] sm:$0xff] }
   0x9   :  { %2150 = vmatprep.subr.mxu1 %v2547_v2  ;;  %2131 = vmatpush3.msra.mxu0 %v37_v8  ;;  %v2749_v42 = vld [vmem:[%s3168_s4] sm:$0xff] }
   0xa   :  { %2151 = vmatpush3.msra.mxu1 %v2637_v9  ;;  %2133 = vmatmul.mubr.msk.f32.vlgmr.msra.gmra.mxu0 %vm48_vm1, %v30_v10  ;;  %v2804_v54 = vld [vmem:[%s3169_s5] ss:$0 sm:$0xff] }
   0xb   :  { %2153 = vmatmul.mubr.f32.vlgmr.msra.gmra.mxu1 %v2547_v2  ;;  %2155 = vmatprep.subr.mxu0 %v2547_v2 }
   0xc   :  { %2174 = vmatprep.subr.mxu1 %v2547_v2  ;;  %2182 = vmatprep.mubr.msk.f32.mxu1 %vm2548_vm0, %v2547_v2 }
   0xd   :  { %2175 = vmatpush3.msra.mxu1 %v2606_v3  ;;  %2135 = vmatprep.mubr.msk.f32.mxu0 %vm48_vm1, %v31_v28 }
   0xe   :  { %2176 = vmatprep.subr.mxu1 %v2547_v2  ;;  %2156 = vmatpush3.msra.mxu0 %v2681_v30 }
   0xf   :  { %2177 = vmatpush3.msra.mxu1 %v2614_v4  ;;  %2157 = vmatprep.subr.mxu0 %v2547_v2 }
  0x10   :  { %2178 = vmatprep.subr.mxu1 %v2547_v2  ;;  %2136 = vmatmul.mubr.msk.f32.gmra.mxu0 %vm48_vm1, %v32_v29 }
  0x11   :  { %2179 = vmatpush3.msra.mxu1 %v2627_v7  ;;  %2158 = vmatpush3.msra.mxu0 %v2687_v31 }
  0x12   :  { %2180 = vmatprep.subr.mxu1 %v2547_v2  ;;  %2138 = vmatprep.mubr.msk.f32.mxu0 %vm48_vm1, %v33_v32 }
  0x13   :  { %2181 = vmatpush3.msra.mxu1 %v2637_v9  ;;  %2159 = vmatprep.subr.mxu0 %v2547_v2 }
  0x14   :  { %2185 = vmatprep.subr.mxu1 %v2547_v2  ;;  %2160 = vmatpush3.msra.mxu0 %v2698_v33 }
  0x15   :  { %2161 = vmatprep.subr.mxu0 %v2547_v2  ;;  %2139 = vmatmul.mubr.msk.f32.gmra.mxu0 %vm48_vm1, %v34_v34 }
  0x16   :  { %2162 = vmatpush3.msra.mxu0 %v2709_v35  ;;  %2141 = vmatprep.mubr.msk.f32.mxu0 %vm48_vm1, %v35_v36 }
  0x17   :  { %2163 = vmatprep.subr.mxu0 %v2547_v2 }
  0x18   :  { %2164 = vmatpush3.msra.mxu0 %v2720_v37 }
  0x19   :  { %2165 = vmatprep.subr.mxu0 %v2547_v2  ;;  %2142 = vmatmul.mubr.msk.f32.gmra.mxu0 %vm48_vm1, %v36_v38 }
  0x1a   :  { %2166 = vmatpush3.msra.mxu0 %v2732_v40  ;;  %2171 = vmatprep.mubr.msk.f32.mxu0 %vm2548_vm0, %v2547_v2 }
  0x1b   :  { %2167 = vmatprep.subr.mxu0 %v2547_v2 }
  0x1c   :  { %2168 = vmatpush3.msra.mxu0 %v2740_v41 }
  0x1d   :  { %2169 = vmatprep.subr.mxu0 %v2547_v2 }
  0x1e   :  { %2170 = vmatpush3.msra.mxu0 %v2749_v42 }
  0x1f   :  { %2204 = vmatprep.subr.mxu0 %v2547_v2 }
  0xca   :  { %v2659_v11 = vpop.f32.mrf.mxu0 }
  0xcb   :  { %v275_v12 = vpop.f32.mrf.mxu1  ;;  %v145_v52 = vadd.f32 %v2659_v11, %v2664_v13 }
  0xcc   :  { %v139_v14 = vpop.f32.mrf.mxu0 }
  0xcd   :  { %v2154_v15 = vpop.f32.mrf.mxu1  ;;  %v140_v16 = vadd.f32 %v2664_v13, %v139_v14 }
  0xcf   :  { %v279_v17 = vadd.f32 %v275_v12, %v140_v16 }
  0xd0   :  { %v2787_v47 = vpop.f32.mrf.mxu0 }
  0xd1   :  { %2403 = vtanh.f32 %v279_v17  ;;  %v1962_v19 = vmul.f32 -1.442695, %v279_v17 }
  0xd2   :  { %v2789_v48 = vpop.f32.mrf.mxu0 }
  0xd3   :  { %2405 = vpow2.f32 %v1962_v19  ;;  %v150_v36 = vadd.f32 %v2664_v13, %v2789_v48 }
  0xd5   :  { %v2791_v49 = vpop.f32.mrf.mxu0 }
  0xd7   :  { %v2793_v50 = vpop.f32.mrf.mxu0 }
  0xd9   :  { %v2795_v51 = vpop.f32.mrf.mxu0 }
  0xdb   :  { %v2799_v53 = vpop.f32.mrf.mxu0 }
  0xde   :  { %v2404_v18 = vpop.eup %2403 }
  0xdf   :  { %289 = vrot.lane.b32.xlu0 %v2404_v18, %s2549_s26 }
  0xe0   :  { %v2406_v20 = vpop.eup %2405 }
  0xe1   :  { %v283_v21 = vadd.f32 1.0, %v2406_v20 }
  0xe3   :  { %2407 = vrcp.f32 %v283_v21 }
  0xf0   :  { %v2408_v22 = vpop.eup %2407 }
  0xf1   :  { %v287_v25 = vmul.f32 0.0, %v2408_v22 }
 0x151   :  { %v290_v23 = vpop.permute.xlu0 %289 }
 0x152   :  { %v292_v24 = vmul.f32 %v2408_v22, %v290_v23 }
 0x154   :  { %294 = vrot.lane.b32.xlu0 %v292_v24, %s2550_s27 }
 0x1c6   :  { %v295_v26 = vpop.permute.xlu0 %294 }
 0x1c7   :  { %v2669_v27 = vadd.f32 %v295_v26, %v287_v25 }
 0x1c9   :  { %2409 = vtanh.f32 %v2669_v27 }
 0x1d6   :  { %v2410_v39 = vpop.eup %2409 }
 0x1d7   :  { %300 = vrot.lane.b32.xlu1 %v2410_v39, %s2549_s26 }
 0x249   :  { %v301_v43 = vpop.permute.xlu1 %300 }
 0x24a   :  { %v303_v44 = vmul.f32 %v2408_v22, %v301_v43 }
 0x24c   :  { %305 = vrot.lane.b32.xlu1 %v303_v44, %s2550_s27 }
 0x2be   :  { %v306_v45 = vpop.permute.xlu1 %305 }
 0x2bf   :  { %v308_v46 = vsel %vm48_vm1, %v306_v45, 0.0  ;;  %2183 = vmatmul.mubr.msk.f32.vlgmr.msra.gmra.mxu1 %vm48_vm1, %v306_v45 }
 0x2c0   :  { %2172 = vmatmul.mubr.msk.f32.vlgmr.msra.gmra.mxu0 %vm309_vm2, %v308_v46  ;;  %2186 = vmatpush3.msra.mxu1 %v2681_v30 }
 0x2c1   :  { %2187 = vmatprep.subr.mxu1 %v2547_v2  ;;  %2205 = vmatpush3.msra.mxu0 %v2606_v3 }
 0x2c2   :  { %2188 = vmatpush3.msra.mxu1 %v2687_v31  ;;  %2206 = vmatprep.subr.mxu0 %v2547_v2 }
 0x2c3   :  { %2189 = vmatprep.subr.mxu1 %v2547_v2  ;;  %2207 = vmatpush3.msra.mxu0 %v2614_v4 }
 0x2c4   :  { %2190 = vmatpush3.msra.mxu1 %v2698_v33  ;;  %2208 = vmatprep.subr.mxu0 %v2547_v2 }
 0x2c5   :  { %2191 = vmatprep.subr.mxu1 %v2547_v2  ;;  %2209 = vmatpush3.msra.mxu0 %v2627_v7 }
 0x2c6   :  { %2192 = vmatpush3.msra.mxu1 %v2709_v35  ;;  %2210 = vmatprep.subr.mxu0 %v2547_v2 }
 0x2c7   :  { %2193 = vmatprep.subr.mxu1 %v2547_v2  ;;  %2211 = vmatpush3.msra.mxu0 %v2637_v9 }
 0x2c8   :  { %2194 = vmatpush3.msra.mxu1 %v2720_v37  ;;  %2212 = vmatprep.mubr.msk.f32.mxu0 %vm2548_vm0, %v2547_v2 }
 0x2c9   :  { %2195 = vmatprep.subr.mxu1 %v2547_v2  ;;  %2201 = vmatprep.mubr.msk.f32.mxu1 %vm2548_vm0, %v2547_v2 }
 0x2ca   :  { %2196 = vmatpush3.msra.mxu1 %v2732_v40  ;;  %2215 = vmatprep.subr.mxu0 %v2547_v2 }
 0x2cb   :  { %2197 = vmatprep.subr.mxu1 %v2547_v2 }
 0x2cc   :  { %2198 = vmatpush3.msra.mxu1 %v2740_v41 }
 0x2cd   :  { %2199 = vmatprep.subr.mxu1 %v2547_v2 }
 0x2ce   :  { %2200 = vmatpush3.msra.mxu1 %v2749_v42 }
 0x2cf   :  { %2234 = vmatprep.subr.mxu1 %v2547_v2 }
 0x37f   :  { %v477_v55 = vpop.f32.mrf.mxu1 }
 0x380   :  { %v481_v56 = vadd.f32 %v477_v55, %v145_v52  ;;  %v379_v57 = vpop.f32.mrf.mxu0 }
 0x381   :  { %v380_v58 = vadd.f32 %v2804_v54, %v379_v57  ;;  %v2184_v59 = vpop.f32.mrf.mxu1 }
 0x382   :  { %2411 = vtanh.f32 %v481_v56  ;;  %v2173_v60 = vpop.f32.mrf.mxu0  ;;  %v1966_v63 = vmul.f32 -1.442695, %v481_v56 }
 0x383   :  { %2413 = vtanh.f32 %v380_v58  ;;  %v1964_v0 = vmul.f32 -1.442695, %v380_v58 }
 0x384   :  { %2415 = vpow2.f32 %v1966_v63 }
 0x385   :  { %2417 = vpow2.f32 %v1964_v0 }
 0x38f   :  { %v2412_v61 = vpop.eup %2411 }
 0x390   :  { %v2414_v62 = vpop.eup %2413  ;;  %491 = vrot.lane.b32.xlu1 %v2412_v61, %s2549_s26 }
 0x391   :  { %392 = vrot.lane.b32.xlu0 %v2414_v62, %s2549_s26  ;;  %v2416_v1 = vpop.eup %2415 }
 0x392   :  { %v2418_v5 = vpop.eup %2417  ;;  %v485_v6 = vadd.f32 1.0, %v2416_v1 }
 0x393   :  { %v386_v8 = vadd.f32 1.0, %v2418_v5 }
 0x394   :  { %2419 = vrcp.f32 %v485_v6 }
 0x395   :  { %2421 = vrcp.f32 %v386_v8 }
 0x3a1   :  { %v2420_v10 = vpop.eup %2419 }
 0x3a2   :  { %v2422_v12 = vpop.eup %2421  ;;  %v489_v17 = vmul.f32 %v2420_v10, %v2669_v27 }
 0x3a3   :  { %v390_v19 = vmul.f32 0.0, %v2422_v12 }
 0x402   :  { %v492_v11 = vpop.permute.xlu1 %491 }
 0x403   :  { %v494_v14 = vmul.f32 %v2420_v10, %v492_v11  ;;  %v393_v15 = vpop.permute.xlu0 %392 }
 0x404   :  { %v395_v16 = vmul.f32 %v2422_v12, %v393_v15 }
 0x405   :  { %496 = vrot.lane.b32.xlu1 %v494_v14, %s2550_s27 }
 0x406   :  { %397 = vrot.lane.b32.xlu0 %v395_v16, %s2550_s27 }
 0x477   :  { %v497_v18 = vpop.permute.xlu1 %496 }
 0x478   :  { %v2812_v20 = vadd.f32 %v497_v18, %v489_v17  ;;  %v398_v21 = vpop.permute.xlu0 %397 }
 0x479   :  { %v2814_v22 = vadd.f32 %v398_v21, %v390_v19 }
 0x47a   :  { %2423 = vtanh.f32 %v2812_v20 }
 0x47b   :  { %2425 = vtanh.f32 %v2814_v22 }
 0x487   :  { %v2424_v23 = vpop.eup %2423 }
 0x488   :  { %v2426_v24 = vpop.eup %2425  ;;  %502 = vrot.lane.b32.xlu1 %v2424_v23, %s2549_s26 }
 0x489   :  { %403 = vrot.lane.b32.xlu0 %v2426_v24, %s2549_s26  ;;  %v155_v24 = vadd.f32 %v2787_v47, %v2664_v13 }
 0x4fa   :  { %v503_v25 = vpop.permute.xlu1 %502 }
 0x4fb   :  { %v505_v26 = vmul.f32 %v2420_v10, %v503_v25  ;;  %v404_v27 = vpop.permute.xlu0 %403 }
 0x4fc   :  { %v406_v28 = vmul.f32 %v2422_v12, %v404_v27 }
 0x4fd   :  { %507 = vrot.lane.b32.xlu0 %v505_v26, %s2550_s27 }
 0x4fe   :  { %511 = vrot.lane.b32.xlu1 %v406_v28, %s2549_s26 }
 0x56f   :  { %v508_v29 = vpop.permute.xlu0 %507 }
 0x570   :  { %v512_v32 = vpop.permute.xlu1 %511  ;;  %2213 = vmatmul.mubr.msk.f32.vlgmr.msra.gmra.mxu0 %vm48_vm1, %v508_v29 }
 0x571   :  { %v514_v34 = vsel %vm48_vm1, %v508_v29, %v512_v32  ;;  %2216 = vmatpush3.msra.mxu0 %v2681_v30  ;;  %2231 = vmatprep.mubr.msk.f32.mxu0 %vm2548_vm0, %v2547_v2 }
 0x572   :  { %2202 = vmatmul.mubr.msk.f32.vlgmr.msra.gmra.mxu1 %vm309_vm2, %v514_v34  ;;  %2217 = vmatprep.subr.mxu0 %v2547_v2 }
 0x573   :  { %2218 = vmatpush3.msra.mxu0 %v2687_v31  ;;  %2235 = vmatpush3.msra.mxu1 %v2606_v3 }
 0x574   :  { %2219 = vmatprep.subr.mxu0 %v2547_v2  ;;  %2236 = vmatprep.subr.mxu1 %v2547_v2 }
 0x575   :  { %2220 = vmatpush3.msra.mxu0 %v2698_v33  ;;  %2237 = vmatpush3.msra.mxu1 %v2614_v4 }
 0x576   :  { %2221 = vmatprep.subr.mxu0 %v2547_v2  ;;  %2238 = vmatprep.subr.mxu1 %v2547_v2 }
 0x577   :  { %2222 = vmatpush3.msra.mxu0 %v2709_v35  ;;  %2239 = vmatpush3.msra.mxu1 %v2627_v7 }
 0x578   :  { %2223 = vmatprep.subr.mxu0 %v2547_v2  ;;  %2240 = vmatprep.subr.mxu1 %v2547_v2 }
 0x579   :  { %2224 = vmatpush3.msra.mxu0 %v2720_v37  ;;  %2241 = vmatpush3.msra.mxu1 %v2637_v9 }
 0x57a   :  { %2225 = vmatprep.subr.mxu0 %v2547_v2  ;;  %2242 = vmatprep.mubr.msk.f32.mxu1 %vm2548_vm0, %v2547_v2 }
 0x57b   :  { %2226 = vmatpush3.msra.mxu0 %v2732_v40  ;;  %2245 = vmatprep.subr.mxu1 %v2547_v2 }
 0x57c   :  { %2227 = vmatprep.subr.mxu0 %v2547_v2 }
 0x57d   :  { %2228 = vmatpush3.msra.mxu0 %v2740_v41 }
 0x57e   :  { %2229 = vmatprep.subr.mxu0 %v2547_v2 }
 0x57f   :  { %2230 = vmatpush3.msra.mxu0 %v2749_v42 }
 0x580   :  { %2264 = vmatprep.subr.mxu0 %v2547_v2 }
 0x630   :  { %v682_v38 = vpop.f32.mrf.mxu0 }
 0x631   :  { %v686_v39 = vadd.f32 %v682_v38, %v150_v36 }
 0x632   :  { %v584_v43 = vpop.f32.mrf.mxu1  ;;  %v2214_v44 = vpop.f32.mrf.mxu0 }
 0x633   :  { %2427 = vtanh.f32 %v686_v39  ;;  %v585_v45 = vadd.f32 %v2804_v54, %v584_v43  ;;  %v1970_v56 = vmul.f32 -1.442695, %v686_v39 }
 0x634   :  { %v2203_v46 = vpop.f32.mrf.mxu1 }
 0x635   :  { %2429 = vtanh.f32 %v585_v45  ;;  %v1968_v57 = vmul.f32 -1.442695, %v585_v45 }
 0x636   :  { %2431 = vpow2.f32 %v1970_v56 }
 0x637   :  { %2433 = vpow2.f32 %v1968_v57 }
 0x640   :  { %v2428_v52 = vpop.eup %2427 }
 0x641   :  { %696 = vrot.lane.b32.xlu1 %v2428_v52, %s2549_s26 }
 0x642   :  { %v2430_v55 = vpop.eup %2429 }
 0x643   :  { %597 = vrot.lane.b32.xlu0 %v2430_v55, %s2549_s26  ;;  %v2432_v48 = vpop.eup %2431 }
 0x644   :  { %v2434_v58 = vpop.eup %2433  ;;  %v690_v59 = vadd.f32 1.0, %v2432_v48 }
 0x645   :  { %v591_v60 = vadd.f32 1.0, %v2434_v58 }
 0x646   :  { %2435 = vrcp.f32 %v690_v59 }
 0x647   :  { %2437 = vrcp.f32 %v591_v60 }
 0x653   :  { %v2436_v61 = vpop.eup %2435 }
 0x654   :  { %v2438_v0 = vpop.eup %2437  ;;  %v694_v6 = vmul.f32 %v2436_v61, %v2812_v20 }
 0x655   :  { %v595_v11 = vmul.f32 %v2438_v0, %v2814_v22 }
 0x6b3   :  { %v697_v62 = vpop.permute.xlu1 %696 }
 0x6b4   :  { %v699_v63 = vmul.f32 %v2436_v61, %v697_v62 }
 0x6b5   :  { %v598_v1 = vpop.permute.xlu0 %597 }
 0x6b6   :  { %701 = vrot.lane.b32.xlu1 %v699_v63, %s2550_s27  ;;  %v600_v5 = vmul.f32 %v2438_v0, %v598_v1 }
 0x6b8   :  { %602 = vrot.lane.b32.xlu0 %v600_v5, %s2550_s27 }
 0x728   :  { %v702_v8 = vpop.permute.xlu1 %701 }
 0x729   :  { %v2861_v10 = vadd.f32 %v702_v8, %v694_v6 }
 0x72a   :  { %v603_v12 = vpop.permute.xlu0 %602 }
 0x72b   :  { %2439 = vtanh.f32 %v2861_v10  ;;  %v2865_v14 = vadd.f32 %v603_v12, %v595_v11 }
 0x72d   :  { %2441 = vtanh.f32 %v2865_v14 }
 0x738   :  { %v2440_v15 = vpop.eup %2439 }
 0x739   :  { %707 = vrot.lane.b32.xlu1 %v2440_v15, %s2549_s26  ;;  %v160_v15 = vadd.f32 %v2664_v13, %v2793_v50 }
 0x73a   :  { %v2442_v16 = vpop.eup %2441 }
 0x73b   :  { %608 = vrot.lane.b32.xlu0 %v2442_v16, %s2549_s26 }
 0x7ab   :  { %v708_v17 = vpop.permute.xlu1 %707 }
 0x7ac   :  { %v710_v18 = vmul.f32 %v2436_v61, %v708_v17 }
 0x7ad   :  { %v609_v19 = vpop.permute.xlu0 %608 }
 0x7ae   :  { %712 = vrot.lane.b32.xlu0 %v710_v18, %s2550_s27  ;;  %v611_v20 = vmul.f32 %v2438_v0, %v609_v19 }
 0x7b0   :  { %716 = vrot.lane.b32.xlu1 %v611_v20, %s2549_s26 }
 0x820   :  { %v713_v21 = vpop.permute.xlu0 %712 }
 0x821   :  { %2243 = vmatmul.mubr.msk.f32.vlgmr.msra.gmra.mxu1 %vm48_vm1, %v713_v21 }
 0x822   :  { %2246 = vmatpush3.msra.mxu1 %v2681_v30  ;;  %2261 = vmatprep.mubr.msk.f32.mxu1 %vm2548_vm0, %v2547_v2  ;;  %v717_v22 = vpop.permute.xlu1 %716 }
 0x823   :  { %2247 = vmatprep.subr.mxu1 %v2547_v2  ;;  %v719_v23 = vsel %vm48_vm1, %v713_v21, %v717_v22 }
 0x824   :  { %2248 = vmatpush3.msra.mxu1 %v2687_v31  ;;  %2232 = vmatmul.mubr.msk.f32.vlgmr.msra.gmra.mxu0 %vm309_vm2, %v719_v23 }
 0x825   :  { %2249 = vmatprep.subr.mxu1 %v2547_v2  ;;  %2265 = vmatpush3.msra.mxu0 %v2606_v3 }
 0x826   :  { %2250 = vmatpush3.msra.mxu1 %v2698_v33  ;;  %2266 = vmatprep.subr.mxu0 %v2547_v2 }
 0x827   :  { %2251 = vmatprep.subr.mxu1 %v2547_v2  ;;  %2267 = vmatpush3.msra.mxu0 %v2614_v4 }
 0x828   :  { %2252 = vmatpush3.msra.mxu1 %v2709_v35  ;;  %2268 = vmatprep.subr.mxu0 %v2547_v2 }
 0x829   :  { %2253 = vmatprep.subr.mxu1 %v2547_v2  ;;  %2269 = vmatpush3.msra.mxu0 %v2627_v7 }
 0x82a   :  { %2254 = vmatpush3.msra.mxu1 %v2720_v37  ;;  %2270 = vmatprep.subr.mxu0 %v2547_v2 }
 0x82b   :  { %2255 = vmatprep.subr.mxu1 %v2547_v2  ;;  %2271 = vmatpush3.msra.mxu0 %v2637_v9 }
 0x82c   :  { %2256 = vmatpush3.msra.mxu1 %v2732_v40  ;;  %2272 = vmatprep.mubr.msk.f32.mxu0 %vm2548_vm0, %v2547_v2 }
 0x82d   :  { %2257 = vmatprep.subr.mxu1 %v2547_v2  ;;  %2275 = vmatprep.subr.mxu0 %v2547_v2 }
 0x82e   :  { %2258 = vmatpush3.msra.mxu1 %v2740_v41 }
 0x82f   :  { %2259 = vmatprep.subr.mxu1 %v2547_v2 }
 0x830   :  { %2260 = vmatpush3.msra.mxu1 %v2749_v42 }
 0x831   :  { %2294 = vmatprep.subr.mxu1 %v2547_v2 }
 0x8e1   :  { %v887_v25 = vpop.f32.mrf.mxu1 }
 0x8e2   :  { %v891_v26 = vadd.f32 %v887_v25, %v155_v24 }
 0x8e3   :  { %v2244_v27 = vpop.f32.mrf.mxu1 }
 0x8e4   :  { %2443 = vtanh.f32 %v891_v26  ;;  %v789_v28 = vpop.f32.mrf.mxu0  ;;  %v1974_v38 = vmul.f32 -1.442695, %v891_v26 }
 0x8e5   :  { %v790_v29 = vadd.f32 %v2804_v54, %v789_v28 }
 0x8e6   :  { %v2233_v32 = vpop.f32.mrf.mxu0 }
 0x8e7   :  { %2445 = vtanh.f32 %v790_v29  ;;  %v1972_v39 = vmul.f32 -1.442695, %v790_v29 }
 0x8e8   :  { %2447 = vpow2.f32 %v1974_v38 }
 0x8e9   :  { %2449 = vpow2.f32 %v1972_v39 }
 0x8f1   :  { %v2444_v34 = vpop.eup %2443 }
 0x8f2   :  { %901 = vrot.lane.b32.xlu1 %v2444_v34, %s2549_s26 }
 0x8f4   :  { %v2446_v36 = vpop.eup %2445 }
 0x8f5   :  { %802 = vrot.lane.b32.xlu0 %v2446_v36, %s2549_s26  ;;  %v2448_v47 = vpop.eup %2447 }
 0x8f6   :  { %v895_v43 = vadd.f32 1.0, %v2448_v47  ;;  %v2450_v44 = vpop.eup %2449 }
 0x8f7   :  { %v796_v45 = vadd.f32 1.0, %v2450_v44 }
 0x8f8   :  { %2451 = vrcp.f32 %v895_v43 }
 0x8f9   :  { %2453 = vrcp.f32 %v796_v45 }
 0x905   :  { %v2452_v46 = vpop.eup %2451 }
 0x906   :  { %v2454_v56 = vpop.eup %2453  ;;  %v899_v58 = vmul.f32 %v2452_v46, %v2861_v10 }
 0x907   :  { %v800_v61 = vmul.f32 %v2454_v56, %v2865_v14 }
 0x964   :  { %v902_v52 = vpop.permute.xlu1 %901 }
 0x965   :  { %v904_v55 = vmul.f32 %v2452_v46, %v902_v52 }
 0x967   :  { %906 = vrot.lane.b32.xlu1 %v904_v55, %s2550_s27  ;;  %v803_v57 = vpop.permute.xlu0 %802 }
 0x968   :  { %v805_v48 = vmul.f32 %v2454_v56, %v803_v57 }
 0x96a   :  { %807 = vrot.lane.b32.xlu0 %v805_v48, %s2550_s27 }
 0x9d9   :  { %v907_v59 = vpop.permute.xlu1 %906 }
 0x9da   :  { %v2911_v60 = vadd.f32 %v907_v59, %v899_v58 }
 0x9dc   :  { %2455 = vtanh.f32 %v2911_v60  ;;  %v808_v62 = vpop.permute.xlu0 %807 }
 0x9dd   :  { %v2915_v63 = vadd.f32 %v808_v62, %v800_v61 }
 0x9df   :  { %2457 = vtanh.f32 %v2915_v63 }
 0x9e9   :  { %v2456_v0 = vpop.eup %2455 }
 0x9ea   :  { %912 = vrot.lane.b32.xlu1 %v2456_v0, %s2549_s26 }
 0x9ec   :  { %v2458_v1 = vpop.eup %2457 }
 0x9ed   :  { %813 = vrot.lane.b32.xlu0 %v2458_v1, %s2549_s26 }
 0xa5c   :  { %v913_v5 = vpop.permute.xlu1 %912 }
 0xa5d   :  { %v915_v6 = vmul.f32 %v2452_v46, %v913_v5 }
 0xa5f   :  { %917 = vrot.lane.b32.xlu0 %v915_v6, %s2550_s27  ;;  %v814_v8 = vpop.permute.xlu0 %813 }
 0xa60   :  { %v816_v10 = vmul.f32 %v2454_v56, %v814_v8 }
 0xa62   :  { %921 = vrot.lane.b32.xlu1 %v816_v10, %s2549_s26 }
 0xad1   :  { %v918_v11 = vpop.permute.xlu0 %917 }
 0xad2   :  { %2273 = vmatmul.mubr.msk.f32.vlgmr.msra.gmra.mxu0 %vm48_vm1, %v918_v11 }
 0xad3   :  { %2276 = vmatpush3.msra.mxu0 %v2681_v30  ;;  %2291 = vmatprep.mubr.msk.f32.mxu0 %vm2548_vm0, %v2547_v2 }
 0xad4   :  { %2277 = vmatprep.subr.mxu0 %v2547_v2  ;;  %v922_v12 = vpop.permute.xlu1 %921 }
 0xad5   :  { %2278 = vmatpush3.msra.mxu0 %v2687_v31  ;;  %v924_v14 = vsel %vm48_vm1, %v918_v11, %v922_v12 }
 0xad6   :  { %2279 = vmatprep.subr.mxu0 %v2547_v2  ;;  %2262 = vmatmul.mubr.msk.f32.vlgmr.msra.gmra.mxu1 %vm309_vm2, %v924_v14 }
 0xad7   :  { %2280 = vmatpush3.msra.mxu0 %v2698_v33  ;;  %2295 = vmatpush3.msra.mxu1 %v2606_v3 }
 0xad8   :  { %2281 = vmatprep.subr.mxu0 %v2547_v2  ;;  %2296 = vmatprep.subr.mxu1 %v2547_v2 }
 0xad9   :  { %2282 = vmatpush3.msra.mxu0 %v2709_v35  ;;  %2297 = vmatpush3.msra.mxu1 %v2614_v4 }
 0xada   :  { %2283 = vmatprep.subr.mxu0 %v2547_v2  ;;  %2298 = vmatprep.subr.mxu1 %v2547_v2 }
 0xadb   :  { %2284 = vmatpush3.msra.mxu0 %v2720_v37  ;;  %2299 = vmatpush3.msra.mxu1 %v2627_v7 }
 0xadc   :  { %2285 = vmatprep.subr.mxu0 %v2547_v2  ;;  %2300 = vmatprep.subr.mxu1 %v2547_v2 }
 0xadd   :  { %2302 = vmatprep.mubr.msk.f32.mxu1 %vm2548_vm0, %v2547_v2  ;;  %2301 = vmatpush3.msra.mxu1 %v2637_v9 }
 0xade   :  { %2286 = vmatpush3.msra.mxu0 %v2732_v40  ;;  %2305 = vmatprep.subr.mxu1 %v2547_v2 }
 0xadf   :  { %2287 = vmatprep.subr.mxu0 %v2547_v2 }
 0xae0   :  { %2288 = vmatpush3.msra.mxu0 %v2740_v41 }
 0xae1   :  { %2289 = vmatprep.subr.mxu0 %v2547_v2 }
 0xae2   :  { %2290 = vmatpush3.msra.mxu0 %v2749_v42 }
 0xae3   :  { %2324 = vmatprep.subr.mxu0 %v2547_v2 }
 0xb92   :  { %v1092_v16 = vpop.f32.mrf.mxu0 }
 0xb93   :  { %v1096_v17 = vadd.f32 %v1092_v16, %v160_v15 }
 0xb94   :  { %v2274_v18 = vpop.f32.mrf.mxu0 }
 0xb95   :  { %2459 = vtanh.f32 %v1096_v17  ;;  %v1978_v24 = vmul.f32 -1.442695, %v1096_v17 }
 0xb96   :  { %v994_v19 = vpop.f32.mrf.mxu1 }
 0xb97   :  { %v995_v20 = vadd.f32 %v2804_v54, %v994_v19 }
 0xb98   :  { %v2263_v21 = vpop.f32.mrf.mxu1 }
 0xb99   :  { %2461 = vtanh.f32 %v995_v20  ;;  %v1976_v25 = vmul.f32 -1.442695, %v995_v20 }
 0xb9a   :  { %2463 = vpow2.f32 %v1978_v24 }
 0xb9b   :  { %2465 = vpow2.f32 %v1976_v25 }
 0xba2   :  { %v2460_v22 = vpop.eup %2459 }
 0xba3   :  { %1106 = vrot.lane.b32.xlu1 %v2460_v22, %s2549_s26 }
 0xba6   :  { %v2462_v23 = vpop.eup %2461 }
 0xba7   :  { %1007 = vrot.lane.b32.xlu0 %v2462_v23, %s2549_s26  ;;  %v2464_v50 = vpop.eup %2463 }
 0xba8   :  { %v1100_v26 = vadd.f32 1.0, %v2464_v50  ;;  %v2466_v27 = vpop.eup %2465 }
 0xba9   :  { %v1001_v28 = vadd.f32 1.0, %v2466_v27 }
 0xbaa   :  { %2467 = vrcp.f32 %v1100_v26 }
 0xbab   :  { %2469 = vrcp.f32 %v1001_v28 }
 0xbb7   :  { %v2468_v29 = vpop.eup %2467 }
 0xbb8   :  { %v2470_v36 = vpop.eup %2469  ;;  %v1104_v47 = vmul.f32 %v2468_v29, %v2911_v60 }
 0xbb9   :  { %v1005_v45 = vmul.f32 %v2470_v36, %v2915_v63 }
 0xc15   :  { %v1107_v32 = vpop.permute.xlu1 %1106 }
 0xc16   :  { %v1109_v34 = vmul.f32 %v2468_v29, %v1107_v32 }
 0xc18   :  { %1111 = vrot.lane.b32.xlu1 %v1109_v34, %s2550_s27 }
 0xc19   :  { %v1008_v38 = vpop.permute.xlu0 %1007 }
 0xc1a   :  { %v1010_v39 = vmul.f32 %v2470_v36, %v1008_v38 }
 0xc1c   :  { %1012 = vrot.lane.b32.xlu0 %v1010_v39, %s2550_s27 }
 0xc8a   :  { %v1112_v43 = vpop.permute.xlu1 %1111 }
 0xc8b   :  { %v2961_v44 = vadd.f32 %v1112_v43, %v1104_v47 }
 0xc8d   :  { %2471 = vtanh.f32 %v2961_v44 }
 0xc8e   :  { %v1013_v46 = vpop.permute.xlu0 %1012 }
 0xc8f   :  { %v2965_v52 = vadd.f32 %v1013_v46, %v1005_v45 }
 0xc91   :  { %2473 = vtanh.f32 %v2965_v52 }
 0xc9a   :  { %v2472_v55 = vpop.eup %2471 }
 0xc9b   :  { %1117 = vrot.lane.b32.xlu1 %v2472_v55, %s2549_s26 }
 0xc9e   :  { %v2474_v56 = vpop.eup %2473 }
 0xc9f   :  { %1018 = vrot.lane.b32.xlu0 %v2474_v56, %s2549_s26 }
 0xd0d   :  { %v1118_v57 = vpop.permute.xlu1 %1117 }
 0xd0e   :  { %v1120_v48 = vmul.f32 %v2468_v29, %v1118_v57 }
 0xd10   :  { %1122 = vrot.lane.b32.xlu0 %v1120_v48, %s2550_s27 }
 0xd11   :  { %v1019_v58 = vpop.permute.xlu0 %1018 }
 0xd12   :  { %v1021_v59 = vmul.f32 %v2470_v36, %v1019_v58 }
 0xd14   :  { %1126 = vrot.lane.b32.xlu1 %v1021_v59, %s2549_s26 }
 0xd82   :  { %v1123_v60 = vpop.permute.xlu0 %1122 }
 0xd83   :  { %2303 = vmatmul.mubr.msk.f32.vlgmr.msra.gmra.mxu1 %vm48_vm1, %v1123_v60 }
 0xd84   :  { %2306 = vmatpush3.msra.mxu1 %v2681_v30  ;;  %2321 = vmatprep.mubr.msk.f32.mxu1 %vm2548_vm0, %v2547_v2 }
 0xd85   :  { %2307 = vmatprep.subr.mxu1 %v2547_v2 }
 0xd86   :  { %2308 = vmatpush3.msra.mxu1 %v2687_v31  ;;  %v1127_v61 = vpop.permute.xlu1 %1126 }
 0xd87   :  { %2309 = vmatprep.subr.mxu1 %v2547_v2  ;;  %v1129_v62 = vsel %vm48_vm1, %v1123_v60, %v1127_v61 }
 0xd88   :  { %2310 = vmatpush3.msra.mxu1 %v2698_v33  ;;  %2292 = vmatmul.mubr.msk.f32.vlgmr.msra.gmra.mxu0 %vm309_vm2, %v1129_v62 }
 0xd89   :  { %2311 = vmatprep.subr.mxu1 %v2547_v2  ;;  %2325 = vmatpush3.msra.mxu0 %v2606_v3  ;;  %v165_v3 = vadd.f32 %v2791_v49, %v2664_v13 }
 0xd8a   :  { %2312 = vmatpush3.msra.mxu1 %v2709_v35  ;;  %2326 = vmatprep.subr.mxu0 %v2547_v2 }
 0xd8b   :  { %2313 = vmatprep.subr.mxu1 %v2547_v2  ;;  %2327 = vmatpush3.msra.mxu0 %v2614_v4 }
 0xd8c   :  { %2314 = vmatpush3.msra.mxu1 %v2720_v37  ;;  %2328 = vmatprep.subr.mxu0 %v2547_v2 }
 0xd8d   :  { %2332 = vmatprep.mubr.msk.f32.mxu0 %vm2548_vm0, %v2547_v2  ;;  %2329 = vmatpush3.msra.mxu0 %v2627_v7 }
 0xd8e   :  { %2315 = vmatprep.subr.mxu1 %v2547_v2  ;;  %2330 = vmatprep.subr.mxu0 %v2547_v2 }
 0xd8f   :  { %2316 = vmatpush3.msra.mxu1 %v2732_v40  ;;  %2331 = vmatpush3.msra.mxu0 %v2637_v9 }
 0xd90   :  { %2317 = vmatprep.subr.mxu1 %v2547_v2  ;;  %2335 = vmatprep.subr.mxu0 %v2547_v2 }
 0xd91   :  { %2318 = vmatpush3.msra.mxu1 %v2740_v41 }
 0xd92   :  { %2319 = vmatprep.subr.mxu1 %v2547_v2 }
 0xd93   :  { %2320 = vmatpush3.msra.mxu1 %v2749_v42 }
 0xd94   :  { %2354 = vmatprep.subr.mxu1 %v2547_v2 }
 0xe43   :  { %v1297_v4 = vpop.f32.mrf.mxu1 }
 0xe44   :  { %v1301_v7 = vadd.f32 %v1297_v4, %v165_v3 }
 0xe45   :  { %v2304_v63 = vpop.f32.mrf.mxu1 }
 0xe46   :  { %2475 = vtanh.f32 %v1301_v7  ;;  %v1982_v8 = vmul.f32 -1.442695, %v1301_v7 }
 0xe48   :  { %v1199_v9 = vpop.f32.mrf.mxu0 }
 0xe49   :  { %v1200_v0 = vadd.f32 %v2804_v54, %v1199_v9 }
 0xe4a   :  { %v2293_v1 = vpop.f32.mrf.mxu0 }
 0xe4b   :  { %2477 = vtanh.f32 %v1200_v0  ;;  %v1980_v10 = vmul.f32 -1.442695, %v1200_v0 }
 0xe4c   :  { %2479 = vpow2.f32 %v1982_v8 }
 0xe4d   :  { %2481 = vpow2.f32 %v1980_v10 }
 0xe53   :  { %v2476_v5 = vpop.eup %2475 }
 0xe54   :  { %1311 = vrot.lane.b32.xlu1 %v2476_v5, %s2549_s26 }
 0xe58   :  { %v2478_v6 = vpop.eup %2477 }
 0xe59   :  { %1212 = vrot.lane.b32.xlu0 %v2478_v6, %s2549_s26  ;;  %v2480_v49 = vpop.eup %2479 }
 0xe5a   :  { %v1305_v11 = vadd.f32 1.0, %v2480_v49  ;;  %v2482_v12 = vpop.eup %2481 }
 0xe5b   :  { %v1206_v14 = vadd.f32 1.0, %v2482_v12  ;;  %v2537_v12 = vld [vmem:[%s3168_s4 + $0x38] sm:$0xff] }
 0xe5c   :  { %2483 = vrcp.f32 %v1305_v11 }
 0xe5d   :  { %2485 = vrcp.f32 %v1206_v14  ;;  %v2538_v14 = vld [vmem:[%s3168_s4 + $0x30] sm:$0xff] }
 0xe69   :  { %v2484_v15 = vpop.eup %2483 }
 0xe6a   :  { %v2486_v18 = vpop.eup %2485  ;;  %v1309_v21 = vmul.f32 %v2484_v15, %v2961_v44 }
 0xe6b   :  { %v1210_v24 = vmul.f32 %v2486_v18, %v2965_v52 }
 0xec6   :  { %v1312_v16 = vpop.permute.xlu1 %1311 }
 0xec7   :  { %v1314_v17 = vmul.f32 %v2484_v15, %v1312_v16 }
 0xec9   :  { %1316 = vrot.lane.b32.xlu1 %v1314_v17, %s2550_s27 }
 0xecb   :  { %v1213_v19 = vpop.permute.xlu0 %1212 }
 0xecc   :  { %v1215_v20 = vmul.f32 %v2486_v18, %v1213_v19  ;;  %v2541_v19 = vld [vmem:[%s3168_s4 + $0x18] sm:$0xff] }
 0xece   :  { %1217 = vrot.lane.b32.xlu0 %v1215_v20, %s2550_s27  ;;  %v2542_v20 = vld [vmem:[%s3168_s4 + $0x10] sm:$0xff] }
 0xf3b   :  { %v1317_v22 = vpop.permute.xlu1 %1316 }
 0xf3c   :  { %v3011_v23 = vadd.f32 %v1317_v22, %v1309_v21  ;;  %v2543_v21 = vld [vmem:[%s3168_s4 + $0x8] sm:$0xff]  ;;  %v2544_v22 = vld [vmem:[%s3168_s4] sm:$0xff] }
 0xf3e   :  { %2487 = vtanh.f32 %v3011_v23 }
 0xf40   :  { %v1218_v25 = vpop.permute.xlu0 %1217 }
 0xf41   :  { %v3015_v50 = vadd.f32 %v1218_v25, %v1210_v24 }
 0xf43   :  { %2489 = vtanh.f32 %v3015_v50 }
 0xf4b   :  { %v2488_v26 = vpop.eup %2487 }
 0xf4c   :  { %1322 = vrot.lane.b32.xlu1 %v2488_v26, %s2549_s26 }
 0xf50   :  { %v2490_v27 = vpop.eup %2489 }
 0xf51   :  { %1223 = vrot.lane.b32.xlu0 %v2490_v27, %s2549_s26 }
 0xfbe   :  { %v1323_v28 = vpop.permute.xlu1 %1322 }
 0xfbf   :  { %v1325_v29 = vmul.f32 %v2484_v15, %v1323_v28  ;;  %v2539_v15 = vld [vmem:[%s3168_s4 + $0x28] sm:$0xff] }
 0xfc1   :  { %1327 = vrot.lane.b32.xlu0 %v1325_v29, %s2550_s27 }
 0xfc3   :  { %v1224_v32 = vpop.permute.xlu0 %1223 }
 0xfc4   :  { %v1226_v34 = vmul.f32 %v2486_v18, %v1224_v32  ;;  %v2540_v18 = vld [vmem:[%s3168_s4 + $0x20] sm:$0xff] }
 0xfc6   :  { %1331 = vrot.lane.b32.xlu1 %v1226_v34, %s2549_s26 }
0x1033   :  { %v1328_v36 = vpop.permute.xlu0 %1327 }
0x1034   :  { %2333 = vmatmul.mubr.msk.f32.vlgmr.msra.gmra.mxu0 %vm48_vm1, %v1328_v36 }
0x1035   :  { %2336 = vmatpush3.msra.mxu0 %v2681_v30  ;;  %2351 = vmatprep.mubr.msk.f32.mxu0 %vm2548_vm0, %v2547_v2  ;;  %v2533_v30 = vld [vmem:[%s3165_s2 + $0x18] sm:$0xff] }
0x1036   :  { %2337 = vmatprep.subr.mxu0 %v2547_v2 }
0x1037   :  { %2338 = vmatpush3.msra.mxu0 %v2687_v31  ;;  %v2534_v31 = vld [vmem:[%s3165_s2 + $0x10] sm:$0xff] }
0x1038   :  { %2339 = vmatprep.subr.mxu0 %v2547_v2  ;;  %v1332_v38 = vpop.permute.xlu1 %1331 }
0x1039   :  { %2340 = vmatpush3.msra.mxu0 %v2698_v33  ;;  %v1334_v39 = vsel %vm48_vm1, %v1328_v36, %v1332_v38  ;;  %v2535_v33 = vld [vmem:[%s3165_s2 + $0x8] sm:$0xff] }
0x103a   :  { %2341 = vmatprep.subr.mxu0 %v2547_v2  ;;  %2322 = vmatmul.mubr.msk.f32.vlgmr.msra.gmra.mxu1 %vm309_vm2, %v1334_v39 }
0x103b   :  { %2342 = vmatpush3.msra.mxu0 %v2709_v35  ;;  %2355 = vmatpush3.msra.mxu1 %v2533_v30  ;;  %v2536_v35 = vld [vmem:[%s3165_s2] sm:$0xff] }
0x103c   :  { %2343 = vmatprep.subr.mxu0 %v2547_v2  ;;  %2356 = vmatprep.subr.mxu1 %v2547_v2 }
0x103d   :  { %2362 = vmatprep.mubr.msk.f32.mxu1 %vm2548_vm0, %v2547_v2  ;;  %2357 = vmatpush3.msra.mxu1 %v2534_v31 }
0x103e   :  { %2344 = vmatpush3.msra.mxu0 %v2720_v37  ;;  %2358 = vmatprep.subr.mxu1 %v2547_v2  ;;  %v170_v37 = vadd.f32 %v2664_v13, %v2799_v53 }
0x103f   :  { %2345 = vmatprep.subr.mxu0 %v2547_v2  ;;  %2359 = vmatpush3.msra.mxu1 %v2535_v33 }
0x1040   :  { %2346 = vmatpush3.msra.mxu0 %v2732_v40  ;;  %2360 = vmatprep.subr.mxu1 %v2547_v2 }
0x1041   :  { %2347 = vmatprep.subr.mxu0 %v2547_v2  ;;  %2361 = vmatpush3.msra.mxu1 %v2536_v35 }
0x1042   :  { %2348 = vmatpush3.msra.mxu0 %v2740_v41  ;;  %2365 = vmatprep.subr.mxu1 %v2547_v2 }
0x1043   :  { %2349 = vmatprep.subr.mxu0 %v2547_v2 }
0x1044   :  { %2350 = vmatpush3.msra.mxu0 %v2749_v42 }
0x1045   :  { %2384 = vmatprep.subr.mxu0 %v2547_v2 }
0x10f4   :  { %v1502_v40 = vpop.f32.mrf.mxu0 }
0x10f5   :  { %v1506_v47 = vadd.f32 %v1502_v40, %v170_v37 }
0x10f6   :  { %v2334_v43 = vpop.f32.mrf.mxu0 }
0x10f7   :  { %2491 = vtanh.f32 %v1506_v47  ;;  %v1986_v42 = vmul.f32 -1.442695, %v1506_v47 }
0x10fa   :  { %v1404_v44 = vpop.f32.mrf.mxu1 }
0x10fb   :  { %v1405_v45 = vadd.f32 %v2804_v54, %v1404_v44 }
0x10fc   :  { %v2323_v46 = vpop.f32.mrf.mxu1 }
0x10fd   :  { %2493 = vtanh.f32 %v1405_v45  ;;  %v1984_v55 = vmul.f32 -1.442695, %v1405_v45 }
0x10fe   :  { %2495 = vpow2.f32 %v1986_v42 }
0x10ff   :  { %2497 = vpow2.f32 %v1984_v55 }
0x1104   :  { %v2492_v41 = vpop.eup %2491 }
0x1105   :  { %1516 = vrot.lane.b32.xlu1 %v2492_v41, %s2549_s26 }
0x110a   :  { %v2494_v52 = vpop.eup %2493 }
0x110b   :  { %1417 = vrot.lane.b32.xlu0 %v2494_v52, %s2549_s26  ;;  %v2496_v13 = vpop.eup %2495 }
0x110c   :  { %v1510_v53 = vadd.f32 1.0, %v2496_v13  ;;  %v2498_v56 = vpop.eup %2497 }
0x110d   :  { %v1411_v57 = vadd.f32 1.0, %v2498_v56 }
0x110e   :  { %2499 = vrcp.f32 %v1510_v53 }
0x110f   :  { %2501 = vrcp.f32 %v1411_v57 }
0x111b   :  { %v2500_v48 = vpop.eup %2499 }
0x111c   :  { %v2502_v60 = vpop.eup %2501  ;;  %v1514_v3 = vmul.f32 %v2500_v48, %v3011_v23  ;;  %v2545_v23 = vld [vmem:[%s3167_s3] ss:$0 sm:$0xff] }
0x111d   :  { %v1415_v63 = vmul.f32 %v2502_v60, %v3015_v50  ;;  %v175_v24 = vadd.f32 %v2545_v23, %v2795_v51 }
0x1177   :  { %v1517_v58 = vpop.permute.xlu1 %1516 }
0x1178   :  { %v1519_v59 = vmul.f32 %v2500_v48, %v1517_v58 }
0x117a   :  { %1521 = vrot.lane.b32.xlu1 %v1519_v59, %s2550_s27 }
0x117d   :  { %v1418_v61 = vpop.permute.xlu0 %1417 }
0x117e   :  { %v1420_v62 = vmul.f32 %v2502_v60, %v1418_v61  ;;  %v2546_v61 = vld [vmem:[%s3169_s5] ss:$0 sm:$0xff] }
0x1180   :  { %1422 = vrot.lane.b32.xlu0 %v1420_v62, %s2550_s27 }
0x11ec   :  { %v1522_v4 = vpop.permute.xlu1 %1521 }
0x11ed   :  { %v3069_v7 = vadd.f32 %v1522_v4, %v1514_v3 }
0x11ef   :  { %2503 = vtanh.f32 %v3069_v7 }
0x11f2   :  { %v1423_v9 = vpop.permute.xlu0 %1422 }
0x11f3   :  { %v3073_v0 = vadd.f32 %v1423_v9, %v1415_v63 }
0x11f5   :  { %2505 = vtanh.f32 %v3073_v0 }
0x11fc   :  { %v2504_v1 = vpop.eup %2503 }
0x11fd   :  { %1527 = vrot.lane.b32.xlu1 %v2504_v1, %s2549_s26 }
0x1202   :  { %v2506_v5 = vpop.eup %2505 }
0x1203   :  { %1428 = vrot.lane.b32.xlu0 %v2506_v5, %s2549_s26 }
0x126f   :  { %v1528_v6 = vpop.permute.xlu1 %1527 }
0x1270   :  { %v1530_v8 = vmul.f32 %v2500_v48, %v1528_v6 }
0x1272   :  { %1532 = vrot.lane.b32.xlu0 %v1530_v8, %s2550_s27 }
0x1275   :  { %v1429_v10 = vpop.permute.xlu0 %1428 }
0x1276   :  { %v1431_v49 = vmul.f32 %v2502_v60, %v1429_v10 }
0x1278   :  { %1536 = vrot.lane.b32.xlu1 %v1431_v49, %s2549_s26  ;;  %v1845_v49 = vld [vmem:[%s3170_s6 + $0x18] sm:$0xff] }
0x12e4   :  { %v1533_v11 = vpop.permute.xlu0 %1532 }
0x12e5   :  { %2363 = vmatmul.mubr.msk.f32.vlgmr.msra.gmra.mxu1 %vm48_vm1, %v1533_v11 }
0x12e6   :  { %2366 = vmatpush3.msra.mxu1 %v2537_v12  ;;  %2381 = vmatprep.mubr.msk.f32.mxu1 %vm2548_vm0, %v2547_v2  ;;  %v1843_v12 = vld [vmem:[%s3170_s6 + $0x8] sm:$0xff] }
0x12e7   :  { %2367 = vmatprep.subr.mxu1 %v2547_v2 }
0x12e8   :  { %2368 = vmatpush3.msra.mxu1 %v2538_v14  ;;  %v1842_v14 = vld [vmem:[%s3170_s6] sm:$0xff] }
0x12e9   :  { %2369 = vmatprep.subr.mxu1 %v2547_v2 }
0x12ea   :  { %2370 = vmatpush3.msra.mxu1 %v2539_v15  ;;  %v1537_v16 = vpop.permute.xlu1 %1536 }
0x12eb   :  { %2371 = vmatprep.subr.mxu1 %v2547_v2  ;;  %v1539_v17 = vsel %vm48_vm1, %v1533_v11, %v1537_v16  ;;  %v1844_v11 = vld [vmem:[%s3170_s6 + $0x10] sm:$0xff] }
0x12ec   :  { %2372 = vmatpush3.msra.mxu1 %v2540_v18  ;;  %2352 = vmatmul.mubr.msk.f32.vlgmr.msra.gmra.mxu0 %vm309_vm2, %v1539_v17 }
0x12ed   :  { %2373 = vmatprep.subr.mxu1 %v2547_v2  ;;  %2392 = vmatprep.mubr.msk.f32.mxu0 %vm2548_vm0, %v2547_v2 }
0x12ee   :  { %2374 = vmatpush3.msra.mxu1 %v2541_v19  ;;  %2385 = vmatpush3.msra.mxu0 %v1845_v49  ;;  %v1928_v19 = vlaneseq }
0x12ef   :  { %2375 = vmatprep.subr.mxu1 %v2547_v2  ;;  %2386 = vmatprep.subr.mxu0 %v2547_v2 }
0x12f0   :  { %2376 = vmatpush3.msra.mxu1 %v2542_v20  ;;  %2387 = vmatpush3.msra.mxu0 %v1844_v11  ;;  %v1993_v20 = vld [vmem:[%s3171_s7] ss:$0 sm:$0xff] }
0x12f1   :  { %2377 = vmatprep.subr.mxu1 %v2547_v2  ;;  %2388 = vmatprep.subr.mxu0 %v2547_v2 }
0x12f2   :  { %2378 = vmatpush3.msra.mxu1 %v2543_v21  ;;  %2389 = vmatpush3.msra.mxu0 %v1843_v12  ;;  %v1929_v21 = vshrl.u32 %v1928_v19, 7 }
0x12f3   :  { %2379 = vmatprep.subr.mxu1 %v2547_v2  ;;  %2390 = vmatprep.subr.mxu0 %v2547_v2 }
0x12f4   :  { %2380 = vmatpush3.msra.mxu1 %v2544_v22  ;;  %2391 = vmatpush3.msra.mxu0 %v1842_v14  ;;  %vm1930_vm3 = vcmp.lt.s32.totalorder %v1929_v21, 2 }
0x13a5   :  { %v1707_v25 = vpop.f32.mrf.mxu1 }
0x13a6   :  { %v1711_v50 = vadd.f32 %v1707_v25, %v175_v24 }
0x13a7   :  { %v2364_v26 = vpop.f32.mrf.mxu1 }
0x13a8   :  { %2507 = vtanh.f32 %v1711_v50  ;;  %v1990_v36 = vmul.f32 -1.442695, %v1711_v50 }
0x13ac   :  { %v1609_v27 = vpop.f32.mrf.mxu0 }
0x13ad   :  { %v1610_v28 = vadd.f32 %v2804_v54, %v1609_v27 }
0x13ae   :  { %v2353_v29 = vpop.f32.mrf.mxu0 }
0x13af   :  { %2509 = vtanh.f32 %v1610_v28  ;;  %v1988_v38 = vmul.f32 -1.442695, %v1610_v28 }
0x13b0   :  { %2511 = vpow2.f32 %v1990_v36 }
0x13b1   :  { %2513 = vpow2.f32 %v1988_v38 }
0x13b5   :  { %v2508_v32 = vpop.eup %2507 }
0x13b6   :  { %1721 = vrot.lane.b32.xlu1 %v2508_v32, %s2549_s26 }
0x13bc   :  { %v2510_v34 = vpop.eup %2509 }
0x13bd   :  { %1622 = vrot.lane.b32.xlu0 %v2510_v34, %s2549_s26  ;;  %v2512_v51 = vpop.eup %2511 }
0x13be   :  { %v1715_v39 = vadd.f32 1.0, %v2512_v51  ;;  %v2514_v30 = vpop.eup %2513 }
0x13bf   :  { %v1616_v31 = vadd.f32 1.0, %v2514_v30 }
0x13c0   :  { %2515 = vrcp.f32 %v1715_v39 }
0x13c1   :  { %2517 = vrcp.f32 %v1616_v31 }
0x13cd   :  { %v2516_v33 = vpop.eup %2515 }
0x13ce   :  { %v2518_v37 = vpop.eup %2517  ;;  %v1719_v43 = vmul.f32 %v2516_v33, %v3069_v7 }
0x13cf   :  { %v1620_v46 = vmul.f32 %v2518_v37, %v3073_v0 }
0x1428   :  { %v1722_v54 = vpop.permute.xlu1 %1721 }
0x1429   :  { %v1724_v35 = vmul.f32 %v2516_v33, %v1722_v54 }
0x142b   :  { %1726 = vrot.lane.b32.xlu1 %v1724_v35, %s2550_s27 }
0x142f   :  { %v1623_v40 = vpop.permute.xlu0 %1622 }
0x1430   :  { %v1625_v47 = vmul.f32 %v2518_v37, %v1623_v40 }
0x1432   :  { %1627 = vrot.lane.b32.xlu0 %v1625_v47, %s2550_s27 }
0x149d   :  { %v1727_v44 = vpop.permute.xlu1 %1726 }
0x149e   :  { %v1729_v45 = vadd.f32 %v1727_v44, %v1719_v43 }
0x14a0   :  { %2519 = vtanh.f32 %v1729_v45 }
0x14a4   :  { %v1628_v41 = vpop.permute.xlu0 %1627 }
0x14a5   :  { %v1630_v52 = vadd.f32 %v1628_v41, %v1620_v46 }
0x14a7   :  { %2521 = vtanh.f32 %v1630_v52 }
0x14ad   :  { %v2520_v42 = vpop.eup %2519 }
0x14ae   :  { %1732 = vrot.lane.b32.xlu1 %v2520_v42, %s2549_s26 }
0x14b4   :  { %v2522_v55 = vpop.eup %2521 }
0x14b5   :  { %1633 = vrot.lane.b32.xlu0 %v2522_v55, %s2549_s26 }
0x1520   :  { %v1733_v13 = vpop.permute.xlu1 %1732 }
0x1521   :  { %v1735_v53 = vmul.f32 %v2516_v33, %v1733_v13 }
0x1523   :  { %1737 = vrot.lane.b32.xlu0 %v1735_v53, %s2550_s27 }
0x1527   :  { %v1634_v56 = vpop.permute.xlu0 %1633 }
0x1528   :  { %v1636_v57 = vmul.f32 %v2518_v37, %v1634_v56 }
0x152a   :  { %1741 = vrot.lane.b32.xlu1 %v1636_v57, %s2549_s26 }
0x1595   :  { %v1738_v48 = vpop.permute.xlu0 %1737 }
0x159c   :  { %v1742_v58 = vpop.permute.xlu1 %1741 }
0x159d   :  { %v1744_v59 = vsel %vm48_vm1, %v1738_v48, %v1742_v58 }
0x159e   :  { %2382 = vmatmul.mubr.msk.f32.vlgmr.msra.gmra.mxu1 %vm309_vm2, %v1744_v59 }
0x165e   :  { %v1814_v60 = vpop.f32.mrf.mxu1 }
0x165f   :  { %v1815_v62 = vadd.f32 %v2546_v61, %v1814_v60 }
0x1660   :  { %v2383_v3 = vpop.f32.mrf.mxu1 }
0x1661   :  { %2523 = vtanh.f32 %v1815_v62  ;;  %v1992_v7 = vmul.f32 -1.442695, %v1815_v62 }
0x1663   :  { %2525 = vpow2.f32 %v1992_v7 }
0x166e   :  { %v2524_v4 = vpop.eup %2523 }
0x166f   :  { %1827 = vrot.lane.b32.xlu0 %v2524_v4, %s2549_s26 }
0x1670   :  { %v2526_v63 = vpop.eup %2525 }
0x1671   :  { %v1821_v9 = vadd.f32 1.0, %v2526_v63 }
0x1673   :  { %2527 = vrcp.f32 %v1821_v9 }
0x1680   :  { %v2528_v0 = vpop.eup %2527 }
0x1681   :  { %v1825_v6 = vmul.f32 %v2528_v0, %v1630_v52 }
0x16e1   :  { %v1828_v1 = vpop.permute.xlu0 %1827 }
0x16e2   :  { %v1830_v5 = vmul.f32 %v2528_v0, %v1828_v1 }
0x16e4   :  { %1832 = vrot.lane.b32.xlu1 %v1830_v5, %s2550_s27 }
0x1756   :  { %v1833_v8 = vpop.permute.xlu1 %1832 }
0x1757   :  { %v1835_v10 = vadd.f32 %v1833_v8, %v1825_v6 }
0x1759   :  { %2529 = vtanh.f32 %v1835_v10 }
0x1766   :  { %v2530_v15 = vpop.eup %2529 }
0x1767   :  { %1838 = vrot.lane.b32.xlu0 %v2530_v15, %s2549_s26 }
0x17d9   :  { %v1839_v16 = vpop.permute.xlu0 %1838 }
0x17da   :  { %v1841_v17 = vmul.f32 %v2528_v0, %v1839_v16 }
0x17dc   :  { %1854 = vrot.lane.b32.xlu1 %v1841_v17, %s2550_s27 }
0x184e   :  { %v1855_v18 = vpop.permute.xlu1 %1854 }
0x184f   :  { %2393 = vmatmul.mubr.msk.f32.vlgmr.msra.gmra.mxu0 %vm48_vm1, %v1855_v18 }
0x190f   :  { %v1924_v22 = vpop.f32.mrf.mxu0 }
0x1910   :  { %v1925_v23 = vadd.f32 %v1993_v20, %v1924_v22 }
0x1911   :  { %v2394_v2 = vpop.f32.mrf.mxu0 }
0x1912   :  { %v1931_v24 = vmul.f32 %v1925_v23, %v1925_v23 }
0x1914   :  { %v1932_v25 = vsel %vm1930_vm3, %v1931_v24, 0.0 }
0x1915   :  { %1933 = vadd.xlane.f32.xlu0 %v1932_v25 }
0x199e   :  { %v1934_v50 = vpop.xlane.xlu0 %1933 }
0x199f   :  { %v1935_v26 = vrot.slane %v1934_v50, 4 }
0x19a1   :  { %v1936_v27 = vadd.f32 %v1935_v26, %v1934_v50 }
0x19a3   :  { %v1937_v28 = vrot.slane %v1936_v27, 2 }
0x19a5   :  { %v1938_v29 = vadd.f32 %v1937_v28, %v1936_v27 }
0x19a7   :  { %v1939_v32 = vrot.slane %v1938_v29, 1 }
0x19a9   :  { %v1940_v34 = vadd.f32 %v1939_v32, %v1938_v29 }
0x19ab   :  { %2395 = vpush %v1940_v34 }
0x19dc   :  { %s2396_s6 = spop %2395 }
0x19dd   :  { %v1942_v36 = vstv %s2396_s6 }
0x19de   :  { %2531 = vrsqrt.f32 %v1942_v36 }
0x19eb   :  { %v2532_v38 = vpop.eup %2531 }
0x19ec   :  { %2397 = vpush %v2532_v38 }
0x1a1d   :  { %s2398_s7 = spop %2397 }
0x1a1e   :  { %v1945_v51 = vstv %s2398_s7 }
0x1a1f   :  { %v1946_v39 = vmul.f32 %v1945_v51, %v1925_v23 }
0x1a21   :  { %1947 = vst [vmem:[%s3172_s8] sm:$0xff] %v1946_v39 }

</bundles_post_ra>
